<compile_context>
chip_gen: v7x
topology: tpu7x:2x2x1
jax: 0.10.0
libtpu: 0.0.40
codegen_flags: <defaults>
</compile_context>

<pallas_src>
import functools

import jax
import jax.numpy as jnp
from jax.experimental import pallas as pl
from jax.experimental.pallas import tpu as pltpu

LEAKY_SLOPE = 0.1


def _leaky(x):
    return jnp.where(x >= 0, x, LEAKY_SLOPE * x)


# ----------------------------------------------------------------------------
# Kernel A: ip_emb -> LeakyReLU -> LSTM (fused gates) -> dyn_emb epilogue
# ----------------------------------------------------------------------------
def _embed_lstm_kernel(x_ref, wip_ref, bip_ref, wih_ref, whh_ref, blstm_ref,
                       wdyn_ref, bdyn_ref, h_out_ref, dyn_out_ref, *, T, N, H):
    # Input projection hoisted out of the recurrence: two matmuls over all
    # T*N rows instead of T small ones on the serial critical path.
    xe = _leaky(jnp.dot(x_ref[...], wip_ref[...],
                        preferred_element_type=jnp.float32) + bip_ref[...])
    gx = jnp.dot(xe, wih_ref[...],
                 preferred_element_type=jnp.float32) + blstm_ref[...]   # (T*N, 4H)

    h = jnp.zeros((N, H), jnp.float32)
    c = jnp.zeros((N, H), jnp.float32)
    # T is tiny and static -> fully unrolled recurrence (values stay in vregs).
    # Per step: one (N,H)x(H,4H) 128-lane matmul + VPU/EUP gate math.
    for t in range(T):
        g = gx[t * N:(t + 1) * N] + jnp.dot(
            h, whh_ref[...], preferred_element_type=jnp.float32)        # (N, 4H)
        i = jax.nn.sigmoid(g[:, 0:H])
        f = jax.nn.sigmoid(g[:, H:2 * H])
        gg = jnp.tanh(g[:, 2 * H:3 * H])
        o = jax.nn.sigmoid(g[:, 3 * H:4 * H])
        c = f * c + i * gg
        h = o * jnp.tanh(c)

    h_out_ref[...] = h
    # dyn_emb fused into the LSTM epilogue (computed for all rows; the hist
    # rows are picked out by the caller).
    dyn_out_ref[...] = _leaky(
        jnp.dot(h, wdyn_ref[...], preferred_element_type=jnp.float32)
        + bdyn_ref[...])


def embed_lstm(x2d, params, *, T, N):
    """x2d: (T*N, 8) pre-padded inputs (t-major). Returns (h_final (N,H),
    leaky(dyn_emb(h_final)) (N,D))."""
    H = params['w_hh'].shape[0]
    D = params['w_dyn'].shape[1]
    vmem = pl.BlockSpec(memory_space=pltpu.MemorySpace.VMEM)
    return pl.pallas_call(
        functools.partial(_embed_lstm_kernel, T=T, N=N, H=H),
        out_shape=(jax.ShapeDtypeStruct((N, H), jnp.float32),
                   jax.ShapeDtypeStruct((N, D), jnp.float32)),
        in_specs=[vmem] * 8,
        out_specs=(vmem, vmem),
    )(x2d, params['w_ip'], params['b_ip'], params['w_ih'], params['w_hh'],
      params['b_lstm'], params['w_dyn'], params['b_dyn'])


# ----------------------------------------------------------------------------
# Kernel B: soc_conv (3x3) + conv_3x1 + MaxPool2d((2,1),pad=(1,0)) fused
# ----------------------------------------------------------------------------
def _soc_conv_kernel(soc_ref, w1_ref, b1_ref, w2_ref, b2_ref, out_ref, *, B):
    h_in = soc_ref.shape[1]          # 13 (grid height)
    h1 = h_in - 2                    # 11 after 3x3 valid conv (width collapses)
    h2 = h1 - 2                      # 9 after 3x1 valid conv
    for b in range(B):               # B is tiny & static
        xb = soc_ref[b]                                          # (13, Gw*C)
        # conv1: sum over kh of shifted-row matmuls (no im2col tensor)
        y1 = b1_ref[...]
        for kh in range(3):
            y1 = y1 + jnp.dot(xb[kh:kh + h1], w1_ref[kh],
                              preferred_element_type=jnp.float32)
        y1 = _leaky(y1)                                          # (11, C1)
        # conv2 (3x1): same trick on rows
        y2 = b2_ref[...]
        for kh in range(3):
            y2 = y2 + jnp.dot(y1[kh:kh + h2], w2_ref[kh],
                              preferred_element_type=jnp.float32)
        y2 = _leaky(y2)                                          # (9, C2)
        # MaxPool2d((2,1), stride (2,1), padding (1,0)): window 0 = row 0
        # (the pad is -inf), window j = max(row 2j-1, row 2j).
        pooled = jnp.concatenate(
            [y2[0:1]] + [jnp.maximum(y2[2 * j - 1:2 * j], y2[2 * j:2 * j + 1])
                         for j in range(1, h2 // 2 + 1)], axis=0)  # (5, C2)
        out_ref[b] = pooled


def soc_conv_pool(soc_rows, params):
    """soc_rows: (B, Gh, Gw*C). Returns pooled (B, Hp, C2)."""
    B, Gh, _ = soc_rows.shape
    C2 = params['w_conv2'].shape[-1]
    Hp = (Gh - 4) // 2 + 1
    vmem = pl.BlockSpec(memory_space=pltpu.MemorySpace.VMEM)
    return pl.pallas_call(
        functools.partial(_soc_conv_kernel, B=B),
        out_shape=jax.ShapeDtypeStruct((B, Hp, C2), jnp.float32),
        in_specs=[vmem] * 5,
        out_specs=vmem,
    )(soc_rows, params['w_conv1'], params['b_conv1'],
      params['w_conv2'], params['b_conv2'])


# ----------------------------------------------------------------------------
# Forward pass (hot paths in the 2 kernels above, tiny glue in plain JAX)
# ----------------------------------------------------------------------------
def csp_encoder_forward(params, hist, nbrs, masks):
    T, B, _ = hist.shape
    Tn, Nn, _ = nbrs.shape
    pad_k = params['w_ip'].shape[0] - 2

    def _run(seq):
        Ts, M, _ = seq.shape
        x2d = jnp.pad(seq.reshape(Ts * M, 2), ((0, 0), (0, pad_k)))
        return embed_lstm(x2d, params, T=Ts, N=M)

    if Tn == T:
        # hist and nbrs share ip_emb/LSTM weights -> run them as ONE batch.
        h_all, dyn_all = _run(jnp.concatenate([hist, nbrs], axis=1))
        hist_enc = dyn_all[:B]                                   # (B, dyn)
        nbrs_enc = h_all[B:]                                     # (Nn, enc)
    else:  # different sequence lengths: fall back to two LSTM calls
        hist_enc = _run(hist)[1]
        nbrs_enc = _run(nbrs)[0]

    # masked_scatter_: cell-granularity gather (masks are cell-uniform — each
    # occupied grid cell is masked across its full encoder vector, exactly how
    # the CS-LSTM dataloader builds them), so one short cumsum + row gather.
    Bm, Gw, Gh, C = masks.shape
    cell_mask = masks[..., 0].reshape(-1)                        # (B*Gw*Gh,)
    idx = jnp.cumsum(cell_mask.astype(jnp.int32)) - 1
    rows = jnp.take(nbrs_enc, jnp.clip(idx, 0, nbrs_enc.shape[0] - 1), axis=0)
    soc = jnp.where(cell_mask[:, None], rows, 0.0).reshape(Bm, Gw, Gh, C)

    # PyTorch permutes to NCHW (B, C, Gh, Gw); we use NHWC with the (Gw, C)
    # minor dims pre-flattened so both convs become row-shifted matmuls.
    soc_rows = jnp.transpose(soc, (0, 2, 1, 3)).reshape(Bm, Gh, Gw * C)

    pooled = soc_conv_pool(soc_rows, params)                     # (B, 5, C2)

    # channel-major flatten (= NCHW .view(-1, soc_embedding_size)) + concat:
    # trivial XLA glue on a (B, 5, C2) / (B, D) pair.
    soc_flat = jnp.transpose(pooled, (0, 2, 1)).reshape(Bm, -1)
    return jnp.concatenate([soc_flat, hist_enc], axis=1)


# ----------------------------------------------------------------------------
# Deterministic synthetic parameters (shapes follow the PyTorch __init__),
# stored directly in the kernel-friendly layouts.
# ----------------------------------------------------------------------------
def init_params(key, args):
    E = args['input_embedding_size']
    H = args['encoder_size']
    D = args['dyn_embedding_size']
    C1 = args['soc_conv_depth']
    C2 = args['conv_3x1_depth']
    ks = jax.random.split(key, 12)

    def u(k, shape, scale=0.1):
        return jax.random.uniform(k, shape, jnp.float32, -scale, scale)

    # PyTorch-shaped parameters
    w_ip_t = u(ks[0], (E, 2));          b_ip = u(ks[1], (E,))
    w_ih_t = u(ks[2], (4 * H, E));      w_hh_t = u(ks[3], (4 * H, H))
    b_ih = u(ks[4], (4 * H,));          b_hh = u(ks[5], (4 * H,))
    w_dyn_t = u(ks[6], (D, H));         b_dyn = u(ks[7], (D,))
    w_c1_t = u(ks[8], (C1, H, 3, 3));   b_c1 = u(ks[9], (C1,))
    w_c2_t = u(ks[10], (C2, C1, 3, 1)); b_c2 = u(ks[11], (C2,))

    # ip_emb weight pre-padded K=2 -> 8 so no per-call weight padding.
    w_ip = jnp.zeros((8, E), jnp.float32).at[:2].set(w_ip_t.T)

    return {
        'w_ip': w_ip, 'b_ip': b_ip[None, :],
        # LSTM gates stacked [i|f|g|o] along the 4H lane axis (one matmul/step)
        'w_ih': w_ih_t.T,                        # (E, 4H)
        'w_hh': w_hh_t.T,                        # (H, 4H)
        'b_lstm': (b_ih + b_hh)[None, :],        # (1, 4H)
        'w_dyn': w_dyn_t.T, 'b_dyn': b_dyn[None, :],
        # conv weights as per-kh matmul slabs; inner (kw, cin) flattened to
        # match the (Gw*C) row layout of the NHWC input.
        'w_conv1': jnp.transpose(w_c1_t, (2, 3, 1, 0)).reshape(3, 3 * H, C1),
        'b_conv1': b_c1[None, :],
        'w_conv2': jnp.transpose(w_c2_t[:, :, :, 0], (2, 1, 0)),   # (3, C1, C2)
        'b_conv2': b_c2[None, :],
    }


# ----------------------------------------------------------------------------
# Pure-JAX reference (same params, straightforward math) for a self-check.
# ----------------------------------------------------------------------------
def reference_forward(params, hist, nbrs, masks):
    hp = jax.lax.Precision.HIGHEST
    pad_k = params['w_ip'].shape[0] - 2

    def lstm_ref(seq):
        T, M, _ = seq.shape
        H = params['w_hh'].shape[0]
        x = jnp.pad(seq, ((0, 0), (0, 0), (0, pad_k)))
        xe = _leaky(jnp.einsum('tmk,ke->tme', x, params['w_ip'], precision=hp)
                    + params['b_ip'])
        h = jnp.zeros((M, H), jnp.float32)
        c = jnp.zeros((M, H), jnp.float32)
        for t in range(T):
            g = (jnp.dot(xe[t], params['w_ih'], precision=hp)
                 + jnp.dot(h, params['w_hh'], precision=hp) + params['b_lstm'])
            i, f, gg, o = jnp.split(g, 4, axis=1)
            c = jax.nn.sigmoid(f) * c + jax.nn.sigmoid(i) * jnp.tanh(gg)
            h = jax.nn.sigmoid(o) * jnp.tanh(c)
        return h

    B = hist.shape[1]
    hist_enc = _leaky(jnp.dot(lstm_ref(hist), params['w_dyn'], precision=hp)
                      + params['b_dyn'])
    nbrs_enc = lstm_ref(nbrs)

    Bm, Gw, Gh, C = masks.shape
    cell_mask = masks[..., 0].reshape(-1)
    idx = jnp.cumsum(cell_mask.astype(jnp.int32)) - 1
    rows = jnp.take(nbrs_enc, jnp.clip(idx, 0, nbrs_enc.shape[0] - 1), axis=0)
    soc = jnp.where(cell_mask[:, None], rows, 0.0).reshape(Bm, Gw, Gh, C)
    x = jnp.transpose(soc, (0, 2, 1, 3)).reshape(Bm, Gh, Gw * C)

    # convs via im2col (structurally different from the kernel's shifted rows)
    H1 = Gh - 2
    p1 = jnp.stack([x[:, i:i + 3].reshape(Bm, 3 * Gw * C) for i in range(H1)], 1)
    y1 = _leaky(jnp.dot(p1, params['w_conv1'].reshape(3 * Gw * C, -1),
                        precision=hp) + params['b_conv1'])
    H2 = H1 - 2
    C1 = y1.shape[-1]
    p2 = jnp.stack([y1[:, i:i + 3].reshape(Bm, 3 * C1) for i in range(H2)], 1)
    y2 = _leaky(jnp.dot(p2, params['w_conv2'].reshape(3 * C1, -1),
                        precision=hp) + params['b_conv2'])
    pooled = jnp.concatenate(
        [y2[:, 0:1]] + [jnp.maximum(y2[:, 2 * j - 1:2 * j], y2[:, 2 * j:2 * j + 1])
                        for j in range(1, H2 // 2 + 1)], axis=1)
    soc_flat = jnp.transpose(pooled, (0, 2, 1)).reshape(Bm, -1)
    return jnp.concatenate([soc_flat, hist_enc], axis=1)


if __name__ == "__main__":
    args = dict(encoder_size=32, grid_size=(13, 3), soc_conv_depth=16,
                conv_3x1_depth=8, dyn_embedding_size=16, input_embedding_size=16)
    key = jax.random.PRNGKey(0)
    kp, kh, kn = jax.random.split(key, 3)
    params = init_params(kp, args)

    T, B, Nn = 8, 2, 6
    hist = jax.random.normal(kh, (T, B, 2), jnp.float32)
    nbrs = jax.random.normal(kn, (T, Nn, 2), jnp.float32)

    # masks: (B, grid_w=3, grid_h=13, encoder_size) bool, one full enc-vector
    # per occupied grid cell; 3 occupied cells per batch element -> 6 == Nn.
    Gh, Gw = args['grid_size']
    cell_mask = jnp.zeros((B, Gw, Gh), dtype=bool)
    for (b, w, h) in [(0, 0, 2), (0, 1, 5), (0, 2, 9),
                      (1, 0, 1), (1, 1, 6), (1, 2, 11)]:
        cell_mask = cell_mask.at[b, w, h].set(True)
    masks = jnp.broadcast_to(cell_mask[..., None],
                             (B, Gw, Gh, args['encoder_size']))

    fwd = jax.jit(functools.partial(csp_encoder_forward, params))
    enc = fwd(hist, nbrs, masks)
    jax.block_until_ready(enc)

    soc_embedding_size = (Gh - 4 + 1) // 2 * args['conv_3x1_depth']   # 5*8 = 40
    assert enc.shape == (B, soc_embedding_size + args['dyn_embedding_size'])
    assert bool(jnp.all(jnp.isfinite(enc)))

    ref = reference_forward(params, hist, nbrs, masks)
    err = float(jnp.max(jnp.abs(enc - ref)))
    assert err < 5e-3, f"kernel vs reference max abs err {err}"
    print("KERNEL_OK")
</pallas_src>

<mosaic_0001>
module attributes {stable_mosaic.version = 11 : i64} {
  func.func @_embed_lstm_kernel(%arg0: memref<64x8xf32, #tpu.memory_space<vmem>>, %arg1: memref<8x16xf32, #tpu.memory_space<vmem>>, %arg2: memref<1x16xf32, #tpu.memory_space<vmem>>, %arg3: memref<16x128xf32, #tpu.memory_space<vmem>>, %arg4: memref<32x128xf32, #tpu.memory_space<vmem>>, %arg5: memref<1x128xf32, #tpu.memory_space<vmem>>, %arg6: memref<32x16xf32, #tpu.memory_space<vmem>>, %arg7: memref<1x16xf32, #tpu.memory_space<vmem>>, %arg8: memref<8x32xf32, #tpu.memory_space<vmem>>, %arg9: memref<8x16xf32, #tpu.memory_space<vmem>>) attributes {dimension_semantics = [], scalar_prefetch = 0 : i64, scratch_operands = 0 : i64, tpu.core_type = #tpu.core_type<tc>} {
    %c0 = arith.constant 0 : index
    %c0_0 = arith.constant 0 : index
    %0 = vector.load %arg0[%c0, %c0_0] : memref<64x8xf32, #tpu.memory_space<vmem>>, vector<64x8xf32>
    %c0_1 = arith.constant 0 : index
    %c0_2 = arith.constant 0 : index
    %1 = vector.load %arg1[%c0_1, %c0_2] : memref<8x16xf32, #tpu.memory_space<vmem>>, vector<8x16xf32>
    %cst = arith.constant dense<0.000000e+00> : vector<64x16xf32>
    %2 = tpu.matmul %0, %1, %cst {dimension_numbers = #tpu.dot_dimension_numbers<[1], [0], [0], [1], [0, 0, 1, 1], [], []>} : vector<64x8xf32>, vector<8x16xf32>, vector<64x16xf32> -> vector<64x16xf32>
    %c0_3 = arith.constant 0 : index
    %c0_4 = arith.constant 0 : index
    %3 = vector.load %arg2[%c0_3, %c0_4] : memref<1x16xf32, #tpu.memory_space<vmem>>, vector<1x16xf32>
    %4 = vector.broadcast %3 : vector<1x16xf32> to vector<64x16xf32>
    %5 = arith.addf %2, %4 : vector<64x16xf32>
    %cst_5 = arith.constant 0.000000e+00 : f32
    %6 = vector.broadcast %cst_5 : f32 to vector<64x16xf32>
    %7 = arith.cmpf oge, %5, %6 : vector<64x16xf32>
    %cst_6 = arith.constant 1.000000e-01 : f32
    %8 = vector.broadcast %cst_6 : f32 to vector<64x16xf32>
    %9 = arith.mulf %8, %5 : vector<64x16xf32>
    %10 = arith.select %7, %5, %9 : vector<64x16xi1>, vector<64x16xf32>
    %c0_7 = arith.constant 0 : index
    %c0_8 = arith.constant 0 : index
    %11 = vector.load %arg3[%c0_7, %c0_8] : memref<16x128xf32, #tpu.memory_space<vmem>>, vector<16x128xf32>
    %cst_9 = arith.constant dense<0.000000e+00> : vector<64x128xf32>
    %12 = tpu.matmul %10, %11, %cst_9 {dimension_numbers = #tpu.dot_dimension_numbers<[1], [0], [0], [1], [0, 0, 1, 1], [], []>} : vector<64x16xf32>, vector<16x128xf32>, vector<64x128xf32> -> vector<64x128xf32>
    %c0_10 = arith.constant 0 : index
    %c0_11 = arith.constant 0 : index
    %13 = vector.load %arg5[%c0_10, %c0_11] : memref<1x128xf32, #tpu.memory_space<vmem>>, vector<1x128xf32>
    %14 = vector.broadcast %13 : vector<1x128xf32> to vector<64x128xf32>
    %15 = arith.addf %12, %14 : vector<64x128xf32>
    %cst_12 = arith.constant 0.000000e+00 : f32
    %16 = vector.broadcast %cst_12 : f32 to vector<8x32xf32>
    %cst_13 = arith.constant 0.000000e+00 : f32
    %17 = vector.broadcast %cst_13 : f32 to vector<8x32xf32>
    %18 = vector.extract_strided_slice %15 {offsets = [0, 0], sizes = [8, 128], strides = [1, 1]} : vector<64x128xf32> to vector<8x128xf32>
    %c0_14 = arith.constant 0 : index
    %c0_15 = arith.constant 0 : index
    %19 = vector.load %arg4[%c0_14, %c0_15] : memref<32x128xf32, #tpu.memory_space<vmem>>, vector<32x128xf32>
    %cst_16 = arith.constant dense<0.000000e+00> : vector<8x128xf32>
    %20 = tpu.matmul %16, %19, %cst_16 {dimension_numbers = #tpu.dot_dimension_numbers<[1], [0], [0], [1], [0, 0, 1, 1], [], []>} : vector<8x32xf32>, vector<32x128xf32>, vector<8x128xf32> -> vector<8x128xf32>
    %21 = arith.addf %18, %20 : vector<8x128xf32>
    %22 = vector.extract_strided_slice %21 {offsets = [0, 0], sizes = [8, 32], strides = [1, 1]} : vector<8x128xf32> to vector<8x32xf32>
    %23 = arith.negf %22 : vector<8x32xf32>
    %24 = math.exp %23 : vector<8x32xf32>
    %cst_17 = arith.constant 1.000000e+00 : f32
    %25 = vector.broadcast %cst_17 : f32 to vector<8x32xf32>
    %26 = arith.addf %25, %24 : vector<8x32xf32>
    %27 = arith.divf %25, %26 : vector<8x32xf32>
    %28 = vector.extract_strided_slice %21 {offsets = [0, 32], sizes = [8, 32], strides = [1, 1]} : vector<8x128xf32> to vector<8x32xf32>
    %29 = arith.negf %28 : vector<8x32xf32>
    %30 = math.exp %29 : vector<8x32xf32>
    %cst_18 = arith.constant 1.000000e+00 : f32
    %31 = vector.broadcast %cst_18 : f32 to vector<8x32xf32>
    %32 = arith.addf %31, %30 : vector<8x32xf32>
    %33 = arith.divf %31, %32 : vector<8x32xf32>
    %34 = vector.extract_strided_slice %21 {offsets = [0, 64], sizes = [8, 32], strides = [1, 1]} : vector<8x128xf32> to vector<8x32xf32>
    %35 = math.tanh %34 : vector<8x32xf32>
    %36 = vector.extract_strided_slice %21 {offsets = [0, 96], sizes = [8, 32], strides = [1, 1]} : vector<8x128xf32> to vector<8x32xf32>
    %37 = arith.negf %36 : vector<8x32xf32>
    %38 = math.exp %37 : vector<8x32xf32>
    %cst_19 = arith.constant 1.000000e+00 : f32
    %39 = vector.broadcast %cst_19 : f32 to vector<8x32xf32>
    %40 = arith.addf %39, %38 : vector<8x32xf32>
    %41 = arith.divf %39, %40 : vector<8x32xf32>
    %42 = arith.mulf %33, %17 : vector<8x32xf32>
    %43 = arith.mulf %27, %35 : vector<8x32xf32>
    %44 = arith.addf %42, %43 : vector<8x32xf32>
    %45 = math.tanh %44 : vector<8x32xf32>
    %46 = arith.mulf %41, %45 : vector<8x32xf32>
    %47 = vector.extract_strided_slice %15 {offsets = [8, 0], sizes = [8, 128], strides = [1, 1]} : vector<64x128xf32> to vector<8x128xf32>
    %c0_20 = arith.constant 0 : index
    %c0_21 = arith.constant 0 : index
    %48 = vector.load %arg4[%c0_20, %c0_21] : memref<32x128xf32, #tpu.memory_space<vmem>>, vector<32x128xf32>
    %cst_22 = arith.constant dense<0.000000e+00> : vector<8x128xf32>
    %49 = tpu.matmul %46, %48, %cst_22 {dimension_numbers = #tpu.dot_dimension_numbers<[1], [0], [0], [1], [0, 0, 1, 1], [], []>} : vector<8x32xf32>, vector<32x128xf32>, vector<8x128xf32> -> vector<8x128xf32>
    %50 = arith.addf %47, %49 : vector<8x128xf32>
    %51 = vector.extract_strided_slice %50 {offsets = [0, 0], sizes = [8, 32], strides = [1, 1]} : vector<8x128xf32> to vector<8x32xf32>
    %52 = arith.negf %51 : vector<8x32xf32>
    %53 = math.exp %52 : vector<8x32xf32>
    %cst_23 = arith.constant 1.000000e+00 : f32
    %54 = vector.broadcast %cst_23 : f32 to vector<8x32xf32>
    %55 = arith.addf %54, %53 : vector<8x32xf32>
    %56 = arith.divf %54, %55 : vector<8x32xf32>
    %57 = vector.extract_strided_slice %50 {offsets = [0, 32], sizes = [8, 32], strides = [1, 1]} : vector<8x128xf32> to vector<8x32xf32>
    %58 = arith.negf %57 : vector<8x32xf32>
    %59 = math.exp %58 : vector<8x32xf32>
    %cst_24 = arith.constant 1.000000e+00 : f32
    %60 = vector.broadcast %cst_24 : f32 to vector<8x32xf32>
    %61 = arith.addf %60, %59 : vector<8x32xf32>
    %62 = arith.divf %60, %61 : vector<8x32xf32>
    %63 = vector.extract_strided_slice %50 {offsets = [0, 64], sizes = [8, 32], strides = [1, 1]} : vector<8x128xf32> to vector<8x32xf32>
    %64 = math.tanh %63 : vector<8x32xf32>
    %65 = vector.extract_strided_slice %50 {offsets = [0, 96], sizes = [8, 32], strides = [1, 1]} : vector<8x128xf32> to vector<8x32xf32>
    %66 = arith.negf %65 : vector<8x32xf32>
    %67 = math.exp %66 : vector<8x32xf32>
    %cst_25 = arith.constant 1.000000e+00 : f32
    %68 = vector.broadcast %cst_25 : f32 to vector<8x32xf32>
    %69 = arith.addf %68, %67 : vector<8x32xf32>
    %70 = arith.divf %68, %69 : vector<8x32xf32>
    %71 = arith.mulf %62, %44 : vector<8x32xf32>
    %72 = arith.mulf %56, %64 : vector<8x32xf32>
    %73 = arith.addf %71, %72 : vector<8x32xf32>
    %74 = math.tanh %73 : vector<8x32xf32>
    %75 = arith.mulf %70, %74 : vector<8x32xf32>
    %76 = vector.extract_strided_slice %15 {offsets = [16, 0], sizes = [8, 128], strides = [1, 1]} : vector<64x128xf32> to vector<8x128xf32>
    %c0_26 = arith.constant 0 : index
    %c0_27 = arith.constant 0 : index
    %77 = vector.load %arg4[%c0_26, %c0_27] : memref<32x128xf32, #tpu.memory_space<vmem>>, vector<32x128xf32>
    %cst_28 = arith.constant dense<0.000000e+00> : vector<8x128xf32>
    %78 = tpu.matmul %75, %77, %cst_28 {dimension_numbers = #tpu.dot_dimension_numbers<[1], [0], [0], [1], [0, 0, 1, 1], [], []>} : vector<8x32xf32>, vector<32x128xf32>, vector<8x128xf32> -> vector<8x128xf32>
    %79 = arith.addf %76, %78 : vector<8x128xf32>
    %80 = vector.extract_strided_slice %79 {offsets = [0, 0], sizes = [8, 32], strides = [1, 1]} : vector<8x128xf32> to vector<8x32xf32>
    %81 = arith.negf %80 : vector<8x32xf32>
    %82 = math.exp %81 : vector<8x32xf32>
    %cst_29 = arith.constant 1.000000e+00 : f32
    %83 = vector.broadcast %cst_29 : f32 to vector<8x32xf32>
    %84 = arith.addf %83, %82 : vector<8x32xf32>
    %85 = arith.divf %83, %84 : vector<8x32xf32>
    %86 = vector.extract_strided_slice %79 {offsets = [0, 32], sizes = [8, 32], strides = [1, 1]} : vector<8x128xf32> to vector<8x32xf32>
    %87 = arith.negf %86 : vector<8x32xf32>
    %88 = math.exp %87 : vector<8x32xf32>
    %cst_30 = arith.constant 1.000000e+00 : f32
    %89 = vector.broadcast %cst_30 : f32 to vector<8x32xf32>
    %90 = arith.addf %89, %88 : vector<8x32xf32>
    %91 = arith.divf %89, %90 : vector<8x32xf32>
    %92 = vector.extract_strided_slice %79 {offsets = [0, 64], sizes = [8, 32], strides = [1, 1]} : vector<8x128xf32> to vector<8x32xf32>
    %93 = math.tanh %92 : vector<8x32xf32>
    %94 = vector.extract_strided_slice %79 {offsets = [0, 96], sizes = [8, 32], strides = [1, 1]} : vector<8x128xf32> to vector<8x32xf32>
    %95 = arith.negf %94 : vector<8x32xf32>
    %96 = math.exp %95 : vector<8x32xf32>
    %cst_31 = arith.constant 1.000000e+00 : f32
    %97 = vector.broadcast %cst_31 : f32 to vector<8x32xf32>
    %98 = arith.addf %97, %96 : vector<8x32xf32>
    %99 = arith.divf %97, %98 : vector<8x32xf32>
    %100 = arith.mulf %91, %73 : vector<8x32xf32>
    %101 = arith.mulf %85, %93 : vector<8x32xf32>
    %102 = arith.addf %100, %101 : vector<8x32xf32>
    %103 = math.tanh %102 : vector<8x32xf32>
    %104 = arith.mulf %99, %103 : vector<8x32xf32>
    %105 = vector.extract_strided_slice %15 {offsets = [24, 0], sizes = [8, 128], strides = [1, 1]} : vector<64x128xf32> to vector<8x128xf32>
    %c0_32 = arith.constant 0 : index
    %c0_33 = arith.constant 0 : index
    %106 = vector.load %arg4[%c0_32, %c0_33] : memref<32x128xf32, #tpu.memory_space<vmem>>, vector<32x128xf32>
    %cst_34 = arith.constant dense<0.000000e+00> : vector<8x128xf32>
    %107 = tpu.matmul %104, %106, %cst_34 {dimension_numbers = #tpu.dot_dimension_numbers<[1], [0], [0], [1], [0, 0, 1, 1], [], []>} : vector<8x32xf32>, vector<32x128xf32>, vector<8x128xf32> -> vector<8x128xf32>
    %108 = arith.addf %105, %107 : vector<8x128xf32>
    %109 = vector.extract_strided_slice %108 {offsets = [0, 0], sizes = [8, 32], strides = [1, 1]} : vector<8x128xf32> to vector<8x32xf32>
    %110 = arith.negf %109 : vector<8x32xf32>
    %111 = math.exp %110 : vector<8x32xf32>
    %cst_35 = arith.constant 1.000000e+00 : f32
    %112 = vector.broadcast %cst_35 : f32 to vector<8x32xf32>
    %113 = arith.addf %112, %111 : vector<8x32xf32>
    %114 = arith.divf %112, %113 : vector<8x32xf32>
    %115 = vector.extract_strided_slice %108 {offsets = [0, 32], sizes = [8, 32], strides = [1, 1]} : vector<8x128xf32> to vector<8x32xf32>
    %116 = arith.negf %115 : vector<8x32xf32>
    %117 = math.exp %116 : vector<8x32xf32>
    %cst_36 = arith.constant 1.000000e+00 : f32
    %118 = vector.broadcast %cst_36 : f32 to vector<8x32xf32>
    %119 = arith.addf %118, %117 : vector<8x32xf32>
    %120 = arith.divf %118, %119 : vector<8x32xf32>
    %121 = vector.extract_strided_slice %108 {offsets = [0, 64], sizes = [8, 32], strides = [1, 1]} : vector<8x128xf32> to vector<8x32xf32>
    %122 = math.tanh %121 : vector<8x32xf32>
    %123 = vector.extract_strided_slice %108 {offsets = [0, 96], sizes = [8, 32], strides = [1, 1]} : vector<8x128xf32> to vector<8x32xf32>
    %124 = arith.negf %123 : vector<8x32xf32>
    %125 = math.exp %124 : vector<8x32xf32>
    %cst_37 = arith.constant 1.000000e+00 : f32
    %126 = vector.broadcast %cst_37 : f32 to vector<8x32xf32>
    %127 = arith.addf %126, %125 : vector<8x32xf32>
    %128 = arith.divf %126, %127 : vector<8x32xf32>
    %129 = arith.mulf %120, %102 : vector<8x32xf32>
    %130 = arith.mulf %114, %122 : vector<8x32xf32>
    %131 = arith.addf %129, %130 : vector<8x32xf32>
    %132 = math.tanh %131 : vector<8x32xf32>
    %133 = arith.mulf %128, %132 : vector<8x32xf32>
    %134 = vector.extract_strided_slice %15 {offsets = [32, 0], sizes = [8, 128], strides = [1, 1]} : vector<64x128xf32> to vector<8x128xf32>
    %c0_38 = arith.constant 0 : index
    %c0_39 = arith.constant 0 : index
    %135 = vector.load %arg4[%c0_38, %c0_39] : memref<32x128xf32, #tpu.memory_space<vmem>>, vector<32x128xf32>
    %cst_40 = arith.constant dense<0.000000e+00> : vector<8x128xf32>
    %136 = tpu.matmul %133, %135, %cst_40 {dimension_numbers = #tpu.dot_dimension_numbers<[1], [0], [0], [1], [0, 0, 1, 1], [], []>} : vector<8x32xf32>, vector<32x128xf32>, vector<8x128xf32> -> vector<8x128xf32>
    %137 = arith.addf %134, %136 : vector<8x128xf32>
    %138 = vector.extract_strided_slice %137 {offsets = [0, 0], sizes = [8, 32], strides = [1, 1]} : vector<8x128xf32> to vector<8x32xf32>
    %139 = arith.negf %138 : vector<8x32xf32>
    %140 = math.exp %139 : vector<8x32xf32>
    %cst_41 = arith.constant 1.000000e+00 : f32
    %141 = vector.broadcast %cst_41 : f32 to vector<8x32xf32>
    %142 = arith.addf %141, %140 : vector<8x32xf32>
    %143 = arith.divf %141, %142 : vector<8x32xf32>
    %144 = vector.extract_strided_slice %137 {offsets = [0, 32], sizes = [8, 32], strides = [1, 1]} : vector<8x128xf32> to vector<8x32xf32>
    %145 = arith.negf %144 : vector<8x32xf32>
    %146 = math.exp %145 : vector<8x32xf32>
    %cst_42 = arith.constant 1.000000e+00 : f32
    %147 = vector.broadcast %cst_42 : f32 to vector<8x32xf32>
    %148 = arith.addf %147, %146 : vector<8x32xf32>
    %149 = arith.divf %147, %148 : vector<8x32xf32>
    %150 = vector.extract_strided_slice %137 {offsets = [0, 64], sizes = [8, 32], strides = [1, 1]} : vector<8x128xf32> to vector<8x32xf32>
    %151 = math.tanh %150 : vector<8x32xf32>
    %152 = vector.extract_strided_slice %137 {offsets = [0, 96], sizes = [8, 32], strides = [1, 1]} : vector<8x128xf32> to vector<8x32xf32>
    %153 = arith.negf %152 : vector<8x32xf32>
    %154 = math.exp %153 : vector<8x32xf32>
    %cst_43 = arith.constant 1.000000e+00 : f32
    %155 = vector.broadcast %cst_43 : f32 to vector<8x32xf32>
    %156 = arith.addf %155, %154 : vector<8x32xf32>
    %157 = arith.divf %155, %156 : vector<8x32xf32>
    %158 = arith.mulf %149, %131 : vector<8x32xf32>
    %159 = arith.mulf %143, %151 : vector<8x32xf32>
    %160 = arith.addf %158, %159 : vector<8x32xf32>
    %161 = math.tanh %160 : vector<8x32xf32>
    %162 = arith.mulf %157, %161 : vector<8x32xf32>
    %163 = vector.extract_strided_slice %15 {offsets = [40, 0], sizes = [8, 128], strides = [1, 1]} : vector<64x128xf32> to vector<8x128xf32>
    %c0_44 = arith.constant 0 : index
    %c0_45 = arith.constant 0 : index
    %164 = vector.load %arg4[%c0_44, %c0_45] : memref<32x128xf32, #tpu.memory_space<vmem>>, vector<32x128xf32>
    %cst_46 = arith.constant dense<0.000000e+00> : vector<8x128xf32>
    %165 = tpu.matmul %162, %164, %cst_46 {dimension_numbers = #tpu.dot_dimension_numbers<[1], [0], [0], [1], [0, 0, 1, 1], [], []>} : vector<8x32xf32>, vector<32x128xf32>, vector<8x128xf32> -> vector<8x128xf32>
    %166 = arith.addf %163, %165 : vector<8x128xf32>
    %167 = vector.extract_strided_slice %166 {offsets = [0, 0], sizes = [8, 32], strides = [1, 1]} : vector<8x128xf32> to vector<8x32xf32>
    %168 = arith.negf %167 : vector<8x32xf32>
    %169 = math.exp %168 : vector<8x32xf32>
    %cst_47 = arith.constant 1.000000e+00 : f32
    %170 = vector.broadcast %cst_47 : f32 to vector<8x32xf32>
    %171 = arith.addf %170, %169 : vector<8x32xf32>
    %172 = arith.divf %170, %171 : vector<8x32xf32>
    %173 = vector.extract_strided_slice %166 {offsets = [0, 32], sizes = [8, 32], strides = [1, 1]} : vector<8x128xf32> to vector<8x32xf32>
    %174 = arith.negf %173 : vector<8x32xf32>
    %175 = math.exp %174 : vector<8x32xf32>
    %cst_48 = arith.constant 1.000000e+00 : f32
    %176 = vector.broadcast %cst_48 : f32 to vector<8x32xf32>
    %177 = arith.addf %176, %175 : vector<8x32xf32>
    %178 = arith.divf %176, %177 : vector<8x32xf32>
    %179 = vector.extract_strided_slice %166 {offsets = [0, 64], sizes = [8, 32], strides = [1, 1]} : vector<8x128xf32> to vector<8x32xf32>
    %180 = math.tanh %179 : vector<8x32xf32>
    %181 = vector.extract_strided_slice %166 {offsets = [0, 96], sizes = [8, 32], strides = [1, 1]} : vector<8x128xf32> to vector<8x32xf32>
    %182 = arith.negf %181 : vector<8x32xf32>
    %183 = math.exp %182 : vector<8x32xf32>
    %cst_49 = arith.constant 1.000000e+00 : f32
    %184 = vector.broadcast %cst_49 : f32 to vector<8x32xf32>
    %185 = arith.addf %184, %183 : vector<8x32xf32>
    %186 = arith.divf %184, %185 : vector<8x32xf32>
    %187 = arith.mulf %178, %160 : vector<8x32xf32>
    %188 = arith.mulf %172, %180 : vector<8x32xf32>
    %189 = arith.addf %187, %188 : vector<8x32xf32>
    %190 = math.tanh %189 : vector<8x32xf32>
    %191 = arith.mulf %186, %190 : vector<8x32xf32>
    %192 = vector.extract_strided_slice %15 {offsets = [48, 0], sizes = [8, 128], strides = [1, 1]} : vector<64x128xf32> to vector<8x128xf32>
    %c0_50 = arith.constant 0 : index
    %c0_51 = arith.constant 0 : index
    %193 = vector.load %arg4[%c0_50, %c0_51] : memref<32x128xf32, #tpu.memory_space<vmem>>, vector<32x128xf32>
    %cst_52 = arith.constant dense<0.000000e+00> : vector<8x128xf32>
    %194 = tpu.matmul %191, %193, %cst_52 {dimension_numbers = #tpu.dot_dimension_numbers<[1], [0], [0], [1], [0, 0, 1, 1], [], []>} : vector<8x32xf32>, vector<32x128xf32>, vector<8x128xf32> -> vector<8x128xf32>
    %195 = arith.addf %192, %194 : vector<8x128xf32>
    %196 = vector.extract_strided_slice %195 {offsets = [0, 0], sizes = [8, 32], strides = [1, 1]} : vector<8x128xf32> to vector<8x32xf32>
    %197 = arith.negf %196 : vector<8x32xf32>
    %198 = math.exp %197 : vector<8x32xf32>
    %cst_53 = arith.constant 1.000000e+00 : f32
    %199 = vector.broadcast %cst_53 : f32 to vector<8x32xf32>
    %200 = arith.addf %199, %198 : vector<8x32xf32>
    %201 = arith.divf %199, %200 : vector<8x32xf32>
    %202 = vector.extract_strided_slice %195 {offsets = [0, 32], sizes = [8, 32], strides = [1, 1]} : vector<8x128xf32> to vector<8x32xf32>
    %203 = arith.negf %202 : vector<8x32xf32>
    %204 = math.exp %203 : vector<8x32xf32>
    %cst_54 = arith.constant 1.000000e+00 : f32
    %205 = vector.broadcast %cst_54 : f32 to vector<8x32xf32>
    %206 = arith.addf %205, %204 : vector<8x32xf32>
    %207 = arith.divf %205, %206 : vector<8x32xf32>
    %208 = vector.extract_strided_slice %195 {offsets = [0, 64], sizes = [8, 32], strides = [1, 1]} : vector<8x128xf32> to vector<8x32xf32>
    %209 = math.tanh %208 : vector<8x32xf32>
    %210 = vector.extract_strided_slice %195 {offsets = [0, 96], sizes = [8, 32], strides = [1, 1]} : vector<8x128xf32> to vector<8x32xf32>
    %211 = arith.negf %210 : vector<8x32xf32>
    %212 = math.exp %211 : vector<8x32xf32>
    %cst_55 = arith.constant 1.000000e+00 : f32
    %213 = vector.broadcast %cst_55 : f32 to vector<8x32xf32>
    %214 = arith.addf %213, %212 : vector<8x32xf32>
    %215 = arith.divf %213, %214 : vector<8x32xf32>
    %216 = arith.mulf %207, %189 : vector<8x32xf32>
    %217 = arith.mulf %201, %209 : vector<8x32xf32>
    %218 = arith.addf %216, %217 : vector<8x32xf32>
    %219 = math.tanh %218 : vector<8x32xf32>
    %220 = arith.mulf %215, %219 : vector<8x32xf32>
    %221 = vector.extract_strided_slice %15 {offsets = [56, 0], sizes = [8, 128], strides = [1, 1]} : vector<64x128xf32> to vector<8x128xf32>
    %c0_56 = arith.constant 0 : index
    %c0_57 = arith.constant 0 : index
    %222 = vector.load %arg4[%c0_56, %c0_57] : memref<32x128xf32, #tpu.memory_space<vmem>>, vector<32x128xf32>
    %cst_58 = arith.constant dense<0.000000e+00> : vector<8x128xf32>
    %223 = tpu.matmul %220, %222, %cst_58 {dimension_numbers = #tpu.dot_dimension_numbers<[1], [0], [0], [1], [0, 0, 1, 1], [], []>} : vector<8x32xf32>, vector<32x128xf32>, vector<8x128xf32> -> vector<8x128xf32>
    %224 = arith.addf %221, %223 : vector<8x128xf32>
    %225 = vector.extract_strided_slice %224 {offsets = [0, 0], sizes = [8, 32], strides = [1, 1]} : vector<8x128xf32> to vector<8x32xf32>
    %226 = arith.negf %225 : vector<8x32xf32>
    %227 = math.exp %226 : vector<8x32xf32>
    %cst_59 = arith.constant 1.000000e+00 : f32
    %228 = vector.broadcast %cst_59 : f32 to vector<8x32xf32>
    %229 = arith.addf %228, %227 : vector<8x32xf32>
    %230 = arith.divf %228, %229 : vector<8x32xf32>
    %231 = vector.extract_strided_slice %224 {offsets = [0, 32], sizes = [8, 32], strides = [1, 1]} : vector<8x128xf32> to vector<8x32xf32>
    %232 = arith.negf %231 : vector<8x32xf32>
    %233 = math.exp %232 : vector<8x32xf32>
    %cst_60 = arith.constant 1.000000e+00 : f32
    %234 = vector.broadcast %cst_60 : f32 to vector<8x32xf32>
    %235 = arith.addf %234, %233 : vector<8x32xf32>
    %236 = arith.divf %234, %235 : vector<8x32xf32>
    %237 = vector.extract_strided_slice %224 {offsets = [0, 64], sizes = [8, 32], strides = [1, 1]} : vector<8x128xf32> to vector<8x32xf32>
    %238 = math.tanh %237 : vector<8x32xf32>
    %239 = vector.extract_strided_slice %224 {offsets = [0, 96], sizes = [8, 32], strides = [1, 1]} : vector<8x128xf32> to vector<8x32xf32>
    %240 = arith.negf %239 : vector<8x32xf32>
    %241 = math.exp %240 : vector<8x32xf32>
    %cst_61 = arith.constant 1.000000e+00 : f32
    %242 = vector.broadcast %cst_61 : f32 to vector<8x32xf32>
    %243 = arith.addf %242, %241 : vector<8x32xf32>
    %244 = arith.divf %242, %243 : vector<8x32xf32>
    %245 = arith.mulf %236, %218 : vector<8x32xf32>
    %246 = arith.mulf %230, %238 : vector<8x32xf32>
    %247 = arith.addf %245, %246 : vector<8x32xf32>
    %248 = math.tanh %247 : vector<8x32xf32>
    %249 = arith.mulf %244, %248 : vector<8x32xf32>
    %c0_62 = arith.constant 0 : index
    %c0_63 = arith.constant 0 : index
    %250 = vector.load %arg8[%c0_62, %c0_63] : memref<8x32xf32, #tpu.memory_space<vmem>>, vector<8x32xf32>
    tpu.vector_store %arg8[%c0_62, %c0_63], %249 {strides = array<i32>} : memref<8x32xf32, #tpu.memory_space<vmem>>, vector<8x32xf32>,
    %c0_64 = arith.constant 0 : index
    %c0_65 = arith.constant 0 : index
    %251 = vector.load %arg6[%c0_64, %c0_65] : memref<32x16xf32, #tpu.memory_space<vmem>>, vector<32x16xf32>
    %cst_66 = arith.constant dense<0.000000e+00> : vector<8x16xf32>
    %252 = tpu.matmul %249, %251, %cst_66 {dimension_numbers = #tpu.dot_dimension_numbers<[1], [0], [0], [1], [0, 0, 1, 1], [], []>} : vector<8x32xf32>, vector<32x16xf32>, vector<8x16xf32> -> vector<8x16xf32>
    %c0_67 = arith.constant 0 : index
    %c0_68 = arith.constant 0 : index
    %253 = vector.load %arg7[%c0_67, %c0_68] : memref<1x16xf32, #tpu.memory_space<vmem>>, vector<1x16xf32>
    %254 = vector.broadcast %253 : vector<1x16xf32> to vector<8x16xf32>
    %255 = arith.addf %252, %254 : vector<8x16xf32>
    %cst_69 = arith.constant 0.000000e+00 : f32
    %256 = vector.broadcast %cst_69 : f32 to vector<8x16xf32>
    %257 = arith.cmpf oge, %255, %256 : vector<8x16xf32>
    %cst_70 = arith.constant 1.000000e-01 : f32
    %258 = vector.broadcast %cst_70 : f32 to vector<8x16xf32>
    %259 = arith.mulf %258, %255 : vector<8x16xf32>
    %260 = arith.select %257, %255, %259 : vector<8x16xi1>, vector<8x16xf32>
    %c0_71 = arith.constant 0 : index
    %c0_72 = arith.constant 0 : index
    %261 = vector.load %arg9[%c0_71, %c0_72] : memref<8x16xf32, #tpu.memory_space<vmem>>, vector<8x16xf32>
    tpu.vector_store %arg9[%c0_71, %c0_72], %260 {strides = array<i32>} : memref<8x16xf32, #tpu.memory_space<vmem>>, vector<8x16xf32>,
    return
  }
}

module attributes {stable_mosaic.version = 11 : i64} {
  func.func @_soc_conv_kernel(%arg0: memref<2x13x96xf32, #tpu.memory_space<vmem>>, %arg1: memref<3x96x16xf32, #tpu.memory_space<vmem>>, %arg2: memref<1x16xf32, #tpu.memory_space<vmem>>, %arg3: memref<3x16x8xf32, #tpu.memory_space<vmem>>, %arg4: memref<1x8xf32, #tpu.memory_space<vmem>>, %arg5: memref<2x5x8xf32, #tpu.memory_space<vmem>>) attributes {dimension_semantics = [], scalar_prefetch = 0 : i64, scratch_operands = 0 : i64, tpu.core_type = #tpu.core_type<tc>} {
    %c0 = arith.constant 0 : index
    %c0_0 = arith.constant 0 : index
    %c0_1 = arith.constant 0 : index
    %0 = vector.load %arg0[%c0, %c0_0, %c0_1] : memref<2x13x96xf32, #tpu.memory_space<vmem>>, vector<1x13x96xf32>
    %1 = vector.shape_cast %0 : vector<1x13x96xf32> to vector<13x96xf32>
    %c0_2 = arith.constant 0 : index
    %c0_3 = arith.constant 0 : index
    %2 = vector.load %arg2[%c0_2, %c0_3] : memref<1x16xf32, #tpu.memory_space<vmem>>, vector<1x16xf32>
    %3 = vector.extract_strided_slice %1 {offsets = [0, 0], sizes = [11, 96], strides = [1, 1]} : vector<13x96xf32> to vector<11x96xf32>
    %c0_4 = arith.constant 0 : index
    %c0_5 = arith.constant 0 : index
    %c0_6 = arith.constant 0 : index
    %4 = vector.load %arg1[%c0_4, %c0_5, %c0_6] : memref<3x96x16xf32, #tpu.memory_space<vmem>>, vector<1x96x16xf32>
    %5 = vector.shape_cast %4 : vector<1x96x16xf32> to vector<96x16xf32>
    %cst = arith.constant dense<0.000000e+00> : vector<11x16xf32>
    %6 = tpu.matmul %3, %5, %cst {dimension_numbers = #tpu.dot_dimension_numbers<[1], [0], [0], [1], [0, 0, 1, 1], [], []>} : vector<11x96xf32>, vector<96x16xf32>, vector<11x16xf32> -> vector<11x16xf32>
    %7 = vector.broadcast %2 : vector<1x16xf32> to vector<11x16xf32>
    %8 = arith.addf %7, %6 : vector<11x16xf32>
    %9 = vector.extract_strided_slice %1 {offsets = [1, 0], sizes = [11, 96], strides = [1, 1]} : vector<13x96xf32> to vector<11x96xf32>
    %c1 = arith.constant 1 : index
    %c0_7 = arith.constant 0 : index
    %c0_8 = arith.constant 0 : index
    %10 = vector.load %arg1[%c1, %c0_7, %c0_8] : memref<3x96x16xf32, #tpu.memory_space<vmem>>, vector<1x96x16xf32>
    %11 = vector.shape_cast %10 : vector<1x96x16xf32> to vector<96x16xf32>
    %cst_9 = arith.constant dense<0.000000e+00> : vector<11x16xf32>
    %12 = tpu.matmul %9, %11, %cst_9 {dimension_numbers = #tpu.dot_dimension_numbers<[1], [0], [0], [1], [0, 0, 1, 1], [], []>} : vector<11x96xf32>, vector<96x16xf32>, vector<11x16xf32> -> vector<11x16xf32>
    %13 = arith.addf %8, %12 : vector<11x16xf32>
    %14 = vector.extract_strided_slice %1 {offsets = [2, 0], sizes = [11, 96], strides = [1, 1]} : vector<13x96xf32> to vector<11x96xf32>
    %c2 = arith.constant 2 : index
    %c0_10 = arith.constant 0 : index
    %c0_11 = arith.constant 0 : index
    %15 = vector.load %arg1[%c2, %c0_10, %c0_11] : memref<3x96x16xf32, #tpu.memory_space<vmem>>, vector<1x96x16xf32>
    %16 = vector.shape_cast %15 : vector<1x96x16xf32> to vector<96x16xf32>
    %cst_12 = arith.constant dense<0.000000e+00> : vector<11x16xf32>
    %17 = tpu.matmul %14, %16, %cst_12 {dimension_numbers = #tpu.dot_dimension_numbers<[1], [0], [0], [1], [0, 0, 1, 1], [], []>} : vector<11x96xf32>, vector<96x16xf32>, vector<11x16xf32> -> vector<11x16xf32>
    %18 = arith.addf %13, %17 : vector<11x16xf32>
    %cst_13 = arith.constant 0.000000e+00 : f32
    %19 = vector.broadcast %cst_13 : f32 to vector<11x16xf32>
    %20 = arith.cmpf oge, %18, %19 : vector<11x16xf32>
    %cst_14 = arith.constant 1.000000e-01 : f32
    %21 = vector.broadcast %cst_14 : f32 to vector<11x16xf32>
    %22 = arith.mulf %21, %18 : vector<11x16xf32>
    %23 = arith.select %20, %18, %22 : vector<11x16xi1>, vector<11x16xf32>
    %c0_15 = arith.constant 0 : index
    %c0_16 = arith.constant 0 : index
    %24 = vector.load %arg4[%c0_15, %c0_16] : memref<1x8xf32, #tpu.memory_space<vmem>>, vector<1x8xf32>
    %25 = vector.extract_strided_slice %23 {offsets = [0, 0], sizes = [9, 16], strides = [1, 1]} : vector<11x16xf32> to vector<9x16xf32>
    %c0_17 = arith.constant 0 : index
    %c0_18 = arith.constant 0 : index
    %c0_19 = arith.constant 0 : index
    %26 = vector.load %arg3[%c0_17, %c0_18, %c0_19] : memref<3x16x8xf32, #tpu.memory_space<vmem>>, vector<1x16x8xf32>
    %27 = vector.shape_cast %26 : vector<1x16x8xf32> to vector<16x8xf32>
    %cst_20 = arith.constant dense<0.000000e+00> : vector<9x8xf32>
    %28 = tpu.matmul %25, %27, %cst_20 {dimension_numbers = #tpu.dot_dimension_numbers<[1], [0], [0], [1], [0, 0, 1, 1], [], []>} : vector<9x16xf32>, vector<16x8xf32>, vector<9x8xf32> -> vector<9x8xf32>
    %29 = vector.broadcast %24 : vector<1x8xf32> to vector<9x8xf32>
    %30 = arith.addf %29, %28 : vector<9x8xf32>
    %31 = vector.extract_strided_slice %23 {offsets = [1, 0], sizes = [9, 16], strides = [1, 1]} : vector<11x16xf32> to vector<9x16xf32>
    %c1_21 = arith.constant 1 : index
    %c0_22 = arith.constant 0 : index
    %c0_23 = arith.constant 0 : index
    %32 = vector.load %arg3[%c1_21, %c0_22, %c0_23] : memref<3x16x8xf32, #tpu.memory_space<vmem>>, vector<1x16x8xf32>
    %33 = vector.shape_cast %32 : vector<1x16x8xf32> to vector<16x8xf32>
    %cst_24 = arith.constant dense<0.000000e+00> : vector<9x8xf32>
    %34 = tpu.matmul %31, %33, %cst_24 {dimension_numbers = #tpu.dot_dimension_numbers<[1], [0], [0], [1], [0, 0, 1, 1], [], []>} : vector<9x16xf32>, vector<16x8xf32>, vector<9x8xf32> -> vector<9x8xf32>
    %35 = arith.addf %30, %34 : vector<9x8xf32>
    %36 = vector.extract_strided_slice %23 {offsets = [2, 0], sizes = [9, 16], strides = [1, 1]} : vector<11x16xf32> to vector<9x16xf32>
    %c2_25 = arith.constant 2 : index
    %c0_26 = arith.constant 0 : index
    %c0_27 = arith.constant 0 : index
    %37 = vector.load %arg3[%c2_25, %c0_26, %c0_27] : memref<3x16x8xf32, #tpu.memory_space<vmem>>, vector<1x16x8xf32>
    %38 = vector.shape_cast %37 : vector<1x16x8xf32> to vector<16x8xf32>
    %cst_28 = arith.constant dense<0.000000e+00> : vector<9x8xf32>
    %39 = tpu.matmul %36, %38, %cst_28 {dimension_numbers = #tpu.dot_dimension_numbers<[1], [0], [0], [1], [0, 0, 1, 1], [], []>} : vector<9x16xf32>, vector<16x8xf32>, vector<9x8xf32> -> vector<9x8xf32>
    %40 = arith.addf %35, %39 : vector<9x8xf32>
    %cst_29 = arith.constant 0.000000e+00 : f32
    %41 = vector.broadcast %cst_29 : f32 to vector<9x8xf32>
    %42 = arith.cmpf oge, %40, %41 : vector<9x8xf32>
    %cst_30 = arith.constant 1.000000e-01 : f32
    %43 = vector.broadcast %cst_30 : f32 to vector<9x8xf32>
    %44 = arith.mulf %43, %40 : vector<9x8xf32>
    %45 = arith.select %42, %40, %44 : vector<9x8xi1>, vector<9x8xf32>
    %46 = vector.extract_strided_slice %45 {offsets = [0, 0], sizes = [1, 8], strides = [1, 1]} : vector<9x8xf32> to vector<1x8xf32>
    %47 = vector.extract_strided_slice %45 {offsets = [1, 0], sizes = [1, 8], strides = [1, 1]} : vector<9x8xf32> to vector<1x8xf32>
    %48 = vector.extract_strided_slice %45 {offsets = [2, 0], sizes = [1, 8], strides = [1, 1]} : vector<9x8xf32> to vector<1x8xf32>
    %49 = arith.maximumf %47, %48 : vector<1x8xf32>
    %50 = vector.extract_strided_slice %45 {offsets = [3, 0], sizes = [1, 8], strides = [1, 1]} : vector<9x8xf32> to vector<1x8xf32>
    %51 = vector.extract_strided_slice %45 {offsets = [4, 0], sizes = [1, 8], strides = [1, 1]} : vector<9x8xf32> to vector<1x8xf32>
    %52 = arith.maximumf %50, %51 : vector<1x8xf32>
    %53 = vector.extract_strided_slice %45 {offsets = [5, 0], sizes = [1, 8], strides = [1, 1]} : vector<9x8xf32> to vector<1x8xf32>
    %54 = vector.extract_strided_slice %45 {offsets = [6, 0], sizes = [1, 8], strides = [1, 1]} : vector<9x8xf32> to vector<1x8xf32>
    %55 = arith.maximumf %53, %54 : vector<1x8xf32>
    %56 = vector.extract_strided_slice %45 {offsets = [7, 0], sizes = [1, 8], strides = [1, 1]} : vector<9x8xf32> to vector<1x8xf32>
    %57 = vector.extract_strided_slice %45 {offsets = [8, 0], sizes = [1, 8], strides = [1, 1]} : vector<9x8xf32> to vector<1x8xf32>
    %58 = arith.maximumf %56, %57 : vector<1x8xf32>
    %59 = tpu.concatenate %46, %49, %52, %55, %58 in 0 : vector<1x8xf32>, vector<1x8xf32>, vector<1x8xf32>, vector<1x8xf32>, vector<1x8xf32> -> vector<5x8xf32>
    %c0_31 = arith.constant 0 : index
    %c0_32 = arith.constant 0 : index
    %c0_33 = arith.constant 0 : index
    %60 = vector.load %arg5[%c0_31, %c0_32, %c0_33] : memref<2x5x8xf32, #tpu.memory_space<vmem>>, vector<1x5x8xf32>
    %61 = vector.shape_cast %60 : vector<1x5x8xf32> to vector<5x8xf32>
    %62 = vector.shape_cast %59 : vector<5x8xf32> to vector<1x5x8xf32>
    tpu.vector_store %arg5[%c0_31, %c0_32, %c0_33], %62 {strides = array<i32>} : memref<2x5x8xf32, #tpu.memory_space<vmem>>, vector<1x5x8xf32>,
    %c1_34 = arith.constant 1 : index
    %c0_35 = arith.constant 0 : index
    %c0_36 = arith.constant 0 : index
    %63 = vector.load %arg0[%c1_34, %c0_35, %c0_36] : memref<2x13x96xf32, #tpu.memory_space<vmem>>, vector<1x13x96xf32>
    %64 = vector.shape_cast %63 : vector<1x13x96xf32> to vector<13x96xf32>
    %c0_37 = arith.constant 0 : index
    %c0_38 = arith.constant 0 : index
    %65 = vector.load %arg2[%c0_37, %c0_38] : memref<1x16xf32, #tpu.memory_space<vmem>>, vector<1x16xf32>
    %66 = vector.extract_strided_slice %64 {offsets = [0, 0], sizes = [11, 96], strides = [1, 1]} : vector<13x96xf32> to vector<11x96xf32>
    %c0_39 = arith.constant 0 : index
    %c0_40 = arith.constant 0 : index
    %c0_41 = arith.constant 0 : index
    %67 = vector.load %arg1[%c0_39, %c0_40, %c0_41] : memref<3x96x16xf32, #tpu.memory_space<vmem>>, vector<1x96x16xf32>
    %68 = vector.shape_cast %67 : vector<1x96x16xf32> to vector<96x16xf32>
    %cst_42 = arith.constant dense<0.000000e+00> : vector<11x16xf32>
    %69 = tpu.matmul %66, %68, %cst_42 {dimension_numbers = #tpu.dot_dimension_numbers<[1], [0], [0], [1], [0, 0, 1, 1], [], []>} : vector<11x96xf32>, vector<96x16xf32>, vector<11x16xf32> -> vector<11x16xf32>
    %70 = vector.broadcast %65 : vector<1x16xf32> to vector<11x16xf32>
    %71 = arith.addf %70, %69 : vector<11x16xf32>
    %72 = vector.extract_strided_slice %64 {offsets = [1, 0], sizes = [11, 96], strides = [1, 1]} : vector<13x96xf32> to vector<11x96xf32>
    %c1_43 = arith.constant 1 : index
    %c0_44 = arith.constant 0 : index
    %c0_45 = arith.constant 0 : index
    %73 = vector.load %arg1[%c1_43, %c0_44, %c0_45] : memref<3x96x16xf32, #tpu.memory_space<vmem>>, vector<1x96x16xf32>
    %74 = vector.shape_cast %73 : vector<1x96x16xf32> to vector<96x16xf32>
    %cst_46 = arith.constant dense<0.000000e+00> : vector<11x16xf32>
    %75 = tpu.matmul %72, %74, %cst_46 {dimension_numbers = #tpu.dot_dimension_numbers<[1], [0], [0], [1], [0, 0, 1, 1], [], []>} : vector<11x96xf32>, vector<96x16xf32>, vector<11x16xf32> -> vector<11x16xf32>
    %76 = arith.addf %71, %75 : vector<11x16xf32>
    %77 = vector.extract_strided_slice %64 {offsets = [2, 0], sizes = [11, 96], strides = [1, 1]} : vector<13x96xf32> to vector<11x96xf32>
    %c2_47 = arith.constant 2 : index
    %c0_48 = arith.constant 0 : index
    %c0_49 = arith.constant 0 : index
    %78 = vector.load %arg1[%c2_47, %c0_48, %c0_49] : memref<3x96x16xf32, #tpu.memory_space<vmem>>, vector<1x96x16xf32>
    %79 = vector.shape_cast %78 : vector<1x96x16xf32> to vector<96x16xf32>
    %cst_50 = arith.constant dense<0.000000e+00> : vector<11x16xf32>
    %80 = tpu.matmul %77, %79, %cst_50 {dimension_numbers = #tpu.dot_dimension_numbers<[1], [0], [0], [1], [0, 0, 1, 1], [], []>} : vector<11x96xf32>, vector<96x16xf32>, vector<11x16xf32> -> vector<11x16xf32>
    %81 = arith.addf %76, %80 : vector<11x16xf32>
    %cst_51 = arith.constant 0.000000e+00 : f32
    %82 = vector.broadcast %cst_51 : f32 to vector<11x16xf32>
    %83 = arith.cmpf oge, %81, %82 : vector<11x16xf32>
    %cst_52 = arith.constant 1.000000e-01 : f32
    %84 = vector.broadcast %cst_52 : f32 to vector<11x16xf32>
    %85 = arith.mulf %84, %81 : vector<11x16xf32>
    %86 = arith.select %83, %81, %85 : vector<11x16xi1>, vector<11x16xf32>
    %c0_53 = arith.constant 0 : index
    %c0_54 = arith.constant 0 : index
    %87 = vector.load %arg4[%c0_53, %c0_54] : memref<1x8xf32, #tpu.memory_space<vmem>>, vector<1x8xf32>
    %88 = vector.extract_strided_slice %86 {offsets = [0, 0], sizes = [9, 16], strides = [1, 1]} : vector<11x16xf32> to vector<9x16xf32>
    %c0_55 = arith.constant 0 : index
    %c0_56 = arith.constant 0 : index
    %c0_57 = arith.constant 0 : index
    %89 = vector.load %arg3[%c0_55, %c0_56, %c0_57] : memref<3x16x8xf32, #tpu.memory_space<vmem>>, vector<1x16x8xf32>
    %90 = vector.shape_cast %89 : vector<1x16x8xf32> to vector<16x8xf32>
    %cst_58 = arith.constant dense<0.000000e+00> : vector<9x8xf32>
    %91 = tpu.matmul %88, %90, %cst_58 {dimension_numbers = #tpu.dot_dimension_numbers<[1], [0], [0], [1], [0, 0, 1, 1], [], []>} : vector<9x16xf32>, vector<16x8xf32>, vector<9x8xf32> -> vector<9x8xf32>
    %92 = vector.broadcast %87 : vector<1x8xf32> to vector<9x8xf32>
    %93 = arith.addf %92, %91 : vector<9x8xf32>
    %94 = vector.extract_strided_slice %86 {offsets = [1, 0], sizes = [9, 16], strides = [1, 1]} : vector<11x16xf32> to vector<9x16xf32>
    %c1_59 = arith.constant 1 : index
    %c0_60 = arith.constant 0 : index
    %c0_61 = arith.constant 0 : index
    %95 = vector.load %arg3[%c1_59, %c0_60, %c0_61] : memref<3x16x8xf32, #tpu.memory_space<vmem>>, vector<1x16x8xf32>
    %96 = vector.shape_cast %95 : vector<1x16x8xf32> to vector<16x8xf32>
    %cst_62 = arith.constant dense<0.000000e+00> : vector<9x8xf32>
    %97 = tpu.matmul %94, %96, %cst_62 {dimension_numbers = #tpu.dot_dimension_numbers<[1], [0], [0], [1], [0, 0, 1, 1], [], []>} : vector<9x16xf32>, vector<16x8xf32>, vector<9x8xf32> -> vector<9x8xf32>
    %98 = arith.addf %93, %97 : vector<9x8xf32>
    %99 = vector.extract_strided_slice %86 {offsets = [2, 0], sizes = [9, 16], strides = [1, 1]} : vector<11x16xf32> to vector<9x16xf32>
    %c2_63 = arith.constant 2 : index
    %c0_64 = arith.constant 0 : index
    %c0_65 = arith.constant 0 : index
    %100 = vector.load %arg3[%c2_63, %c0_64, %c0_65] : memref<3x16x8xf32, #tpu.memory_space<vmem>>, vector<1x16x8xf32>
    %101 = vector.shape_cast %100 : vector<1x16x8xf32> to vector<16x8xf32>
    %cst_66 = arith.constant dense<0.000000e+00> : vector<9x8xf32>
    %102 = tpu.matmul %99, %101, %cst_66 {dimension_numbers = #tpu.dot_dimension_numbers<[1], [0], [0], [1], [0, 0, 1, 1], [], []>} : vector<9x16xf32>, vector<16x8xf32>, vector<9x8xf32> -> vector<9x8xf32>
    %103 = arith.addf %98, %102 : vector<9x8xf32>
    %cst_67 = arith.constant 0.000000e+00 : f32
    %104 = vector.broadcast %cst_67 : f32 to vector<9x8xf32>
    %105 = arith.cmpf oge, %103, %104 : vector<9x8xf32>
    %cst_68 = arith.constant 1.000000e-01 : f32
    %106 = vector.broadcast %cst_68 : f32 to vector<9x8xf32>
    %107 = arith.mulf %106, %103 : vector<9x8xf32>
    %108 = arith.select %105, %103, %107 : vector<9x8xi1>, vector<9x8xf32>
    %109 = vector.extract_strided_slice %108 {offsets = [0, 0], sizes = [1, 8], strides = [1, 1]} : vector<9x8xf32> to vector<1x8xf32>
    %110 = vector.extract_strided_slice %108 {offsets = [1, 0], sizes = [1, 8], strides = [1, 1]} : vector<9x8xf32> to vector<1x8xf32>
    %111 = vector.extract_strided_slice %108 {offsets = [2, 0], sizes = [1, 8], strides = [1, 1]} : vector<9x8xf32> to vector<1x8xf32>
    %112 = arith.maximumf %110, %111 : vector<1x8xf32>
    %113 = vector.extract_strided_slice %108 {offsets = [3, 0], sizes = [1, 8], strides = [1, 1]} : vector<9x8xf32> to vector<1x8xf32>
    %114 = vector.extract_strided_slice %108 {offsets = [4, 0], sizes = [1, 8], strides = [1, 1]} : vector<9x8xf32> to vector<1x8xf32>
    %115 = arith.maximumf %113, %114 : vector<1x8xf32>
    %116 = vector.extract_strided_slice %108 {offsets = [5, 0], sizes = [1, 8], strides = [1, 1]} : vector<9x8xf32> to vector<1x8xf32>
    %117 = vector.extract_strided_slice %108 {offsets = [6, 0], sizes = [1, 8], strides = [1, 1]} : vector<9x8xf32> to vector<1x8xf32>
    %118 = arith.maximumf %116, %117 : vector<1x8xf32>
    %119 = vector.extract_strided_slice %108 {offsets = [7, 0], sizes = [1, 8], strides = [1, 1]} : vector<9x8xf32> to vector<1x8xf32>
    %120 = vector.extract_strided_slice %108 {offsets = [8, 0], sizes = [1, 8], strides = [1, 1]} : vector<9x8xf32> to vector<1x8xf32>
    %121 = arith.maximumf %119, %120 : vector<1x8xf32>
    %122 = tpu.concatenate %109, %112, %115, %118, %121 in 0 : vector<1x8xf32>, vector<1x8xf32>, vector<1x8xf32>, vector<1x8xf32>, vector<1x8xf32> -> vector<5x8xf32>
    %c1_69 = arith.constant 1 : index
    %c0_70 = arith.constant 0 : index
    %c0_71 = arith.constant 0 : index
    %123 = vector.load %arg5[%c1_69, %c0_70, %c0_71] : memref<2x5x8xf32, #tpu.memory_space<vmem>>, vector<1x5x8xf32>
    %124 = vector.shape_cast %123 : vector<1x5x8xf32> to vector<5x8xf32>
    %125 = vector.shape_cast %122 : vector<5x8xf32> to vector<1x5x8xf32>
    tpu.vector_store %arg5[%c1_69, %c0_70, %c0_71], %125 {strides = array<i32>} : memref<2x5x8xf32, #tpu.memory_space<vmem>>, vector<1x5x8xf32>,
    return
  }
}

</mosaic_0001>

<bundles_post_ra>
// kernel: csp_encoder_forward.2
= control target key start
LH: loop header
LB: loop body
LE: loop exit
PB: predicated region body
PF: predicated region fallthrough
CT: control target
= control target key end

     0   :  { %vm47_vm0 = vcmask 64512   ;;  %v1600_v11 = vmov 0.0|0.0   ;;  %vm1601_vm1 = vmmov 0   ;;  %v1602_v19 = vmov 0.0   ;;  %s1604_s17 = smov 32   ;;  %s1860_s1 = inlined_call_operand.vmem [shape: f32[8,16], index: 1, kind: input, shape index: {}]   ;;  %s1861_s0 = inlined_call_operand.vmem [shape: f32[64,8], index: 0, kind: input, shape index: {}]   ;;  %s1862_s4 = inlined_call_operand.vmem [shape: f32[32,128], index: 4, kind: input, shape index: {}]   ;;  %s1863_s3 = inlined_call_operand.vmem [shape: f32[16,128], index: 3, kind: input, shape index: {}]   ;;  %s1864_s2 = inlined_call_operand.vmem [shape: f32[1,16], index: 2, kind: input, shape index: {}]   ;;  %s1865_s5 = inlined_call_operand.vmem [shape: f32[1,128], index: 5, kind: input, shape index: {}]   ;;  %s1866_s6 = inlined_call_operand.vmem [shape: f32[32,16], index: 6, kind: input, shape index: {}]   ;;  %s1867_s8 = inlined_call_operand.vmem [shape: f32[8,32], index: 8, kind: output, shape index: {0}]   ;;  %s1868_s7 = inlined_call_operand.vmem [shape: f32[1,16], index: 7, kind: input, shape index: {}]   ;;  %s1869_s9 = inlined_call_operand.vmem [shape: f32[8,16], index: 9, kind: output, shape index: {1}]  }
   0x1   :  { %v39_v0 = vld [vmem:[%s1860_s1] sm:$0xff]  ;;  %v32_v2 = vld [vmem:[%s1861_s0 + $0x8] sm:$0xff]  ;;  %v33_v3 = vld [vmem:[%s1861_s0 + $0x10] sm:$0xff]  ;;  %vm210_vm4 = vcmask 130048   ;;  %vm344_vm11 = vcmask 261120  }
   0x2   :  { %v31_v1 = vld [vmem:[%s1861_s0] sm:$0xff]  ;;  %1342 = vmatprep.subr.mxu0 %v39_v0  ;;  %1529 = vmatprep.subr.mxu1 %v39_v0  ;;  %v37_v4 = vld [vmem:[%s1861_s0 + $0x30] sm:$0xff]  ;;  %v38_v5 = vld [vmem:[%s1861_s0 + $0x38] sm:$0xff] }
   0x3   :  { %1344 = vmatprep.mubr.msk.f32.mxu0 %vm47_vm0, %v31_v1  ;;  %1343 = vmatpush3.msra.mxu0 %v39_v0  ;;  %v340_v6 = vld [vmem:[%s1862_s4] sm:$0xff]  ;;  %v341_v7 = vld [vmem:[%s1862_s4 + $0x8] sm:$0xff]  ;;  %v34_v8 = vld [vmem:[%s1861_s0 + $0x18] sm:$0xff] }
   0x4   :  { %1345 = vmatmul.mubr.msk.f32.vlgmr.msra.gmra.mrb[0].mxu0 %vm47_vm0, %v32_v2  ;;  %1530 = vmatpush3.msra.mxu1 %v39_v0  ;;  %v1686_v9 = vpack.c.bf16 %v341_v7, %v340_v6  ;;  %v35_v10 = vld [vmem:[%s1861_s0 + $0x20] sm:$0xff]  ;;  %v36_v12 = vld [vmem:[%s1861_s0 + $0x28] sm:$0xff]  ;;  %v342_v16 = vld [vmem:[%s1862_s4 + $0x10] sm:$0xff] }
   0x5   :  { %1347 = vmatprep.mubr.msk.f32.mxu0 %vm47_vm0, %v33_v3  ;;  %1353 = vmatprep.mubr.msk.f32.mxu1 %vm47_vm0, %v37_v4  ;;  %v201_v13 = vld [vmem:[%s1863_s3] sm:$0xff]  ;;  %v202_v14 = vld [vmem:[%s1863_s3 + $0x8] sm:$0xff]  ;;  %v343_v17 = vld [vmem:[%s1862_s4 + $0x18] sm:$0xff] }
   0x6   :  { %1475 = vmatprep.subr.bf16.mxu0 %v1600_v11  ;;  %1354 = vmatmul.mubr.msk.f32.vlgmr.msra.gmra.mrb[0].mxu1 %vm47_vm0, %v38_v5  ;;  %v1471_v15 = vpack.c.bf16 %v202_v14, %v201_v13  ;;  %v1713_v18 = vpack.c.bf16 %v343_v17, %v342_v16  ;;  %v1243_v20 = vld [vmem:[%s1864_s2] ss:$0 sm:$0xff] }
   0x7   :  { %1477 = vmatpush3.bf16.msra.mxu0 %v1686_v9  ;;  %v1252_v55 = vld [vmem:[%s1865_s5] ss:$0 sm:$0xff]  ;;  %s1603_s5 = smov 64  }
   0x8   :  { %1348 = vmatmul.mubr.msk.f32.gmra.mrb[2].mxu0 %vm47_vm0, %v34_v8  ;;  %1478 = vmatprep.subr.bf16.mxu0 %v1600_v11 }
   0x9   :  { %1350 = vmatprep.mubr.msk.f32.mxu0 %vm47_vm0, %v35_v10  ;;  %1472 = vmatprep.subr.bf16.mxu1 %v1471_v15 }
   0xa   :  { %1474 = vmatpush3.bf16.msra.mxu1 %v1471_v15 }
   0xb   :  { %1481 = vmatprep.subr.bf16.mxu1 %v1600_v11  ;;  %1480 = vmatpush3.bf16.msra.mxu0 %v1713_v18 }
   0xc   :  { %1351 = vmatmul.mubr.msk.f32.gmra.mrb[4].mxu0 %vm47_vm0, %v36_v12  ;;  %1487 = vmatprep.subr.bf16.mxu0 %v1600_v11 }
   0xd   :  { %1380 = vmatprep.mubr.msk.f32.mxu0 %vm1601_vm1, %v1602_v19 }
  0x10   :  { %1381 = vmatmul.mubr.f32.vlgmr.msra.gmra.mrb[6].mxu0 %v1602_v19 }
  0x11   :  { %1489 = vmatpush3.bf16.msra.mxu0 %v1686_v9  ;;  %1402 = vmatprep.mubr.msk.f32.mxu0 %vm1601_vm1, %v1602_v19 }
  0x12   :  { %1490 = vmatprep.subr.bf16.mxu0 %v1600_v11 }
  0x15   :  { %1492 = vmatpush3.bf16.msra.mxu0 %v1713_v18 }
  0x16   :  { %1499 = vmatprep.subr.bf16.mxu0 %v1600_v11 }
  0xd7   :  { %v1346_v21 = vpop.f32.mrb[0].mxu0 }
  0xd8   :  { %v144_v22 = vadd.f32 %v1346_v21, %v1243_v20  ;;  %v138_v23 = vpop.f32.mrb[1].mxu0 }
  0xd9   :  { %v139_v24 = vadd.f32 %v1243_v20, %v138_v23  ;;  %v1355_v25 = vpop.f32.mrb[0].mxu1 }
  0xda   :  { %v186_v26 = vmul.f32 0.1, %v144_v22  ;;  %v168_v27 = vpop.f32.mrb[1].mxu1  ;;  %vm178_vm2 = vcmp.ge.f32.partialorder %v144_v22, 0.0  ;;  %v174_v41 = vadd.f32 %v1355_v25, %v1243_v20 }
  0xdb   :  { %vm177_vm3 = vcmp.ge.f32.partialorder %v139_v24, 0.0  ;;  %v185_v28 = vmul.f32 0.1, %v139_v24  ;;  %v1349_v29 = vpop.f32.mrb[2].mxu0  ;;  %v169_v34 = vadd.f32 %v1243_v20, %v168_v27 }
  0xdc   :  { %v154_v30 = vadd.f32 %v1349_v29, %v1243_v20  ;;  %v148_v31 = vpop.f32.mrb[3].mxu0  ;;  %v194_v35 = vsel %vm178_vm2, %v144_v22, %v186_v26  ;;  %v192_v48 = vmul.f32 0.1, %v174_v41  ;;  %vm184_vm10 = vcmp.ge.f32.partialorder %v174_v41, 0.0 }
  0xdd   :  { %v193_v32 = vsel %vm177_vm3, %v139_v24, %v185_v28  ;;  %v149_v33 = vadd.f32 %v1243_v20, %v148_v31  ;;  %v191_v45 = vmul.f32 0.1, %v169_v34  ;;  %vm183_vm8 = vcmp.ge.f32.partialorder %v169_v34, 0.0 }
  0xde   :  { %1360 = vmatprep.mubr.msk.f32.mxu1 %vm210_vm4, %v193_v32  ;;  %vm180_vm5 = vcmp.ge.f32.partialorder %v154_v30, 0.0  ;;  %v188_v36 = vmul.f32 0.1, %v154_v30  ;;  %v200_v52 = vsel %vm184_vm10, %v174_v41, %v192_v48 }
  0xdf   :  { %1361 = vmatmul.mubr.msk.f32.vlgmr.msra.gmra.mrb[2].mxu1 %vm210_vm4, %v194_v35  ;;  %vm179_vm6 = vcmp.ge.f32.partialorder %v149_v33, 0.0  ;;  %v187_v37 = vmul.f32 0.1, %v149_v33  ;;  %v1352_v38 = vpop.f32.mrb[4].mxu0  ;;  %v199_v51 = vsel %vm183_vm8, %v169_v34, %v191_v45 }
  0xe0   :  { %v164_v39 = vadd.f32 %v1352_v38, %v1243_v20  ;;  %v158_v40 = vpop.f32.mrb[5].mxu0  ;;  %v196_v42 = vsel %vm180_vm5, %v154_v30, %v188_v36  ;;  %1483 = vmatpush3.bf16.msra.mxu1 %v1686_v9 }
  0xe1   :  { %v159_v43 = vadd.f32 %v1243_v20, %v158_v40  ;;  %v195_v44 = vsel %vm179_vm6, %v149_v33, %v187_v37  ;;  %1484 = vmatprep.subr.bf16.mxu1 %v1600_v11 }
  0xe2   :  { %vm182_vm7 = vcmp.ge.f32.partialorder %v164_v39, 0.0  ;;  %v190_v46 = vmul.f32 0.1, %v164_v39  ;;  %1363 = vmatprep.mubr.msk.f32.mxu1 %vm210_vm4, %v195_v44 }
  0xe3   :  { %vm181_vm9 = vcmp.ge.f32.partialorder %v159_v43, 0.0  ;;  %v189_v47 = vmul.f32 0.1, %v159_v43  ;;  %1364 = vmatmul.mubr.msk.f32.gmra.mrb[4].mxu1 %vm210_vm4, %v196_v42  ;;  %v414_v53 = vpop.f32.mrb[6].mxu0 }
  0xe4   :  { %v198_v49 = vsel %vm182_vm7, %v164_v39, %v190_v46  ;;  %1486 = vmatpush3.bf16.msra.mxu1 %v1713_v18  ;;  %v1382_v54 = vpop.f32.mrb[7].mxu0 }
  0xe5   :  { %v197_v50 = vsel %vm181_vm9, %v159_v43, %v189_v47  ;;  %1493 = vmatprep.subr.bf16.mxu1 %v1600_v11 }
  0xe6   :  { %1366 = vmatprep.mubr.msk.f32.mxu1 %vm210_vm4, %v197_v50 }
  0xe7   :  { %1367 = vmatmul.mubr.msk.f32.gmra.mrb[6].mxu1 %vm210_vm4, %v198_v49 }
  0xe8   :  { %1369 = vmatprep.mubr.msk.f32.mxu1 %vm210_vm4, %v199_v51 }
  0xeb   :  { %1370 = vmatmul.mubr.msk.f32.gmra.mrb[8].mxu1 %vm210_vm4, %v200_v52 }
  0xec   :  { %1391 = vmatprep.mubr.msk.f32.mxu1 %vm1601_vm1, %v1602_v19 }
 0x1b2   :  { %v1362_v56 = vpop.f32.mrb[2].mxu1 }
 0x1b3   :  { %v307_v57 = vadd.f32 %v1362_v56, %v1252_v55  ;;  %v301_v58 = vpop.f32.mrb[3].mxu1 }
 0x1b4   :  { %v302_v59 = vadd.f32 %v1252_v55, %v301_v58 }
 0x1b6   :  { %v418_v60 = vadd.f32 %v414_v53, %v302_v59  ;;  %v1365_v61 = vpop.f32.mrb[4].mxu1 }
 0x1b7   :  { %v1747_v62 = vadd.f32 %v1365_v61, %v1252_v55  ;;  %v311_v63 = vpop.f32.mrb[5].mxu1 }
 0x1b8   :  { %1536 = vtanh.f32 %v418_v60  ;;  %v1749_v0 = vadd.f32 %v1252_v55, %v311_v63  ;;  %v1261_v12 = vmul.f32 -1.442695, %v418_v60 }
 0x1ba   :  { %v1368_v1 = vpop.f32.mrb[6].mxu1  ;;  %1538 = vpow2.f32 %v1261_v12 }
 0x1bb   :  { %v1751_v2 = vadd.f32 %v1368_v1, %v1252_v55  ;;  %v321_v3 = vpop.f32.mrb[7].mxu1 }
 0x1bc   :  { %v1753_v4 = vadd.f32 %v1252_v55, %v321_v3 }
 0x1be   :  { %v1371_v5 = vpop.f32.mrb[8].mxu1 }
 0x1bf   :  { %v1755_v6 = vadd.f32 %v1371_v5, %v1252_v55  ;;  %v331_v7 = vpop.f32.mrb[9].mxu1 }
 0x1c0   :  { %v1757_v8 = vadd.f32 %v1252_v55, %v331_v7 }
 0x1c2   :  { %v1537_v10 = vpop.eup %1536 }
 0x1c3   :  { %428 = vrot.lane.b32.xlu0 %v1537_v10, %s1603_s5 }
 0x1c4   :  { %v1539_v13 = vpop.eup %1538 }
 0x1c5   :  { %v422_v14 = vadd.f32 1.0, %v1539_v13 }
 0x1c7   :  { %1540 = vrcp.f32 %v422_v14 }
 0x1d1   :  { %v1541_v15 = vpop.eup %1540 }
 0x1d2   :  { %v426_v20 = vmul.f32 0.0, %v1541_v15 }
 0x235   :  { %v429_v16 = vpop.permute.xlu0 %428 }
 0x236   :  { %v431_v17 = vmul.f32 %v1541_v15, %v429_v16 }
 0x238   :  { %433 = vrot.lane.b32.xlu0 %v431_v17, %s1604_s17 }
 0x2aa   :  { %v434_v21 = vpop.permute.xlu0 %433 }
 0x2ab   :  { %v436_v22 = vadd.f32 %v434_v21, %v426_v20 }
 0x2ad   :  { %1542 = vtanh.f32 %v436_v22 }
 0x2b7   :  { %v1543_v23 = vpop.eup %1542 }
 0x2b8   :  { %439 = vrot.lane.b32.xlu1 %v1543_v23, %s1603_s5 }
 0x32a   :  { %v440_v24 = vpop.permute.xlu1 %439 }
 0x32b   :  { %v442_v25 = vmul.f32 %v1541_v15, %v440_v24 }
 0x32d   :  { %444 = vrot.lane.b32.xlu1 %v442_v25, %s1604_s17 }
 0x39f   :  { %v445_v26 = vpop.permute.xlu1 %444 }
 0x3a0   :  { %1392 = vmatmul.mubr.msk.f32.vlgmr.msra.gmra.mrb[10].mxu1 %vm344_vm11, %v445_v26 }
 0x3a1   :  { %1495 = vmatpush3.bf16.msra.mxu1 %v1686_v9  ;;  %1413 = vmatprep.mubr.msk.f32.mxu1 %vm1601_vm1, %v1602_v19 }
 0x3a2   :  { %1496 = vmatprep.subr.bf16.mxu1 %v1600_v11 }
 0x3a5   :  { %1498 = vmatpush3.bf16.msra.mxu1 %v1713_v18 }
 0x3a6   :  { %1505 = vmatprep.subr.bf16.mxu1 %v1600_v11 }
 0x473   :  { %v514_v27 = vpop.f32.mrb[10].mxu1 }
 0x474   :  { %v518_v28 = vadd.f32 %v514_v27, %v307_v57  ;;  %v1393_v29 = vpop.f32.mrb[11].mxu1 }
 0x476   :  { %1544 = vtanh.f32 %v518_v28  ;;  %v1263_v31 = vmul.f32 -1.442695, %v518_v28 }
 0x478   :  { %1546 = vpow2.f32 %v1263_v31 }
 0x480   :  { %v1545_v30 = vpop.eup %1544 }
 0x481   :  { %528 = vrot.lane.b32.xlu0 %v1545_v30, %s1603_s5 }
 0x482   :  { %v1547_v32 = vpop.eup %1546 }
 0x483   :  { %v522_v33 = vadd.f32 1.0, %v1547_v32 }
 0x485   :  { %1548 = vrcp.f32 %v522_v33 }
 0x48f   :  { %v1549_v34 = vpop.eup %1548 }
 0x490   :  { %v526_v37 = vmul.f32 %v1549_v34, %v436_v22 }
 0x4f3   :  { %v529_v35 = vpop.permute.xlu0 %528 }
 0x4f4   :  { %v531_v36 = vmul.f32 %v1549_v34, %v529_v35 }
 0x4f6   :  { %533 = vrot.lane.b32.xlu1 %v531_v36, %s1604_s17 }
 0x568   :  { %v534_v38 = vpop.permute.xlu1 %533 }
 0x569   :  { %v536_v39 = vadd.f32 %v534_v38, %v526_v37 }
 0x56b   :  { %1550 = vtanh.f32 %v536_v39 }
 0x575   :  { %v1551_v40 = vpop.eup %1550 }
 0x576   :  { %539 = vrot.lane.b32.xlu0 %v1551_v40, %s1603_s5 }
 0x5e8   :  { %v540_v41 = vpop.permute.xlu0 %539 }
 0x5e9   :  { %v542_v42 = vmul.f32 %v1549_v34, %v540_v41 }
 0x5eb   :  { %544 = vrot.lane.b32.xlu1 %v542_v42, %s1604_s17 }
 0x65d   :  { %v545_v43 = vpop.permute.xlu1 %544 }
 0x65e   :  { %1403 = vmatmul.mubr.msk.f32.vlgmr.msra.gmra.mrb[8].mxu0 %vm344_vm11, %v545_v43 }
 0x65f   :  { %1501 = vmatpush3.bf16.msra.mxu0 %v1686_v9  ;;  %1424 = vmatprep.mubr.msk.f32.mxu0 %vm1601_vm1, %v1602_v19 }
 0x660   :  { %1502 = vmatprep.subr.bf16.mxu0 %v1600_v11 }
 0x663   :  { %1504 = vmatpush3.bf16.msra.mxu0 %v1713_v18 }
 0x664   :  { %1511 = vmatprep.subr.bf16.mxu0 %v1600_v11 }
 0x731   :  { %v614_v44 = vpop.f32.mrb[8].mxu0 }
 0x732   :  { %v618_v45 = vadd.f32 %v614_v44, %v1749_v0  ;;  %v1404_v46 = vpop.f32.mrb[9].mxu0 }
 0x734   :  { %1552 = vtanh.f32 %v618_v45  ;;  %v1265_v48 = vmul.f32 -1.442695, %v618_v45 }
 0x736   :  { %1554 = vpow2.f32 %v1265_v48 }
 0x73e   :  { %v1553_v47 = vpop.eup %1552 }
 0x73f   :  { %628 = vrot.lane.b32.xlu0 %v1553_v47, %s1603_s5 }
 0x740   :  { %v1555_v49 = vpop.eup %1554 }
 0x741   :  { %v622_v50 = vadd.f32 1.0, %v1555_v49 }
 0x743   :  { %1556 = vrcp.f32 %v622_v50 }
 0x74d   :  { %v1557_v51 = vpop.eup %1556 }
 0x74e   :  { %v626_v54 = vmul.f32 %v1557_v51, %v536_v39 }
 0x7b1   :  { %v629_v52 = vpop.permute.xlu0 %628 }
 0x7b2   :  { %v631_v53 = vmul.f32 %v1557_v51, %v629_v52 }
 0x7b4   :  { %633 = vrot.lane.b32.xlu1 %v631_v53, %s1604_s17 }
 0x826   :  { %v634_v55 = vpop.permute.xlu1 %633 }
 0x827   :  { %v636_v56 = vadd.f32 %v634_v55, %v626_v54 }
 0x829   :  { %1558 = vtanh.f32 %v636_v56 }
 0x833   :  { %v1559_v57 = vpop.eup %1558 }
 0x834   :  { %639 = vrot.lane.b32.xlu0 %v1559_v57, %s1603_s5 }
 0x8a6   :  { %v640_v58 = vpop.permute.xlu0 %639 }
 0x8a7   :  { %v642_v59 = vmul.f32 %v1557_v51, %v640_v58 }
 0x8a9   :  { %644 = vrot.lane.b32.xlu1 %v642_v59, %s1604_s17 }
 0x91b   :  { %v645_v60 = vpop.permute.xlu1 %644 }
 0x91c   :  { %1414 = vmatmul.mubr.msk.f32.vlgmr.msra.gmra.mrb[12].mxu1 %vm344_vm11, %v645_v60 }
 0x91d   :  { %1507 = vmatpush3.bf16.msra.mxu1 %v1686_v9  ;;  %1435 = vmatprep.mubr.msk.f32.mxu1 %vm1601_vm1, %v1602_v19 }
 0x91e   :  { %1508 = vmatprep.subr.bf16.mxu1 %v1600_v11 }
 0x921   :  { %1510 = vmatpush3.bf16.msra.mxu1 %v1713_v18 }
 0x922   :  { %1517 = vmatprep.subr.bf16.mxu1 %v1600_v11 }
 0x9ef   :  { %v714_v61 = vpop.f32.mrb[12].mxu1 }
 0x9f0   :  { %v718_v63 = vadd.f32 %v714_v61, %v1747_v62  ;;  %v1415_v0 = vpop.f32.mrb[13].mxu1 }
 0x9f2   :  { %1560 = vtanh.f32 %v718_v63  ;;  %v1267_v3 = vmul.f32 -1.442695, %v718_v63 }
 0x9f4   :  { %1562 = vpow2.f32 %v1267_v3 }
 0x9fc   :  { %v1561_v1 = vpop.eup %1560 }
 0x9fd   :  { %728 = vrot.lane.b32.xlu0 %v1561_v1, %s1603_s5 }
 0x9fe   :  { %v1563_v5 = vpop.eup %1562 }
 0x9ff   :  { %v722_v7 = vadd.f32 1.0, %v1563_v5 }
 0xa01   :  { %1564 = vrcp.f32 %v722_v7 }
 0xa0b   :  { %v1565_v10 = vpop.eup %1564 }
 0xa0c   :  { %v726_v14 = vmul.f32 %v1565_v10, %v636_v56 }
 0xa6f   :  { %v729_v12 = vpop.permute.xlu0 %728 }
 0xa70   :  { %v731_v13 = vmul.f32 %v1565_v10, %v729_v12 }
 0xa72   :  { %733 = vrot.lane.b32.xlu1 %v731_v13, %s1604_s17 }
 0xae4   :  { %v734_v15 = vpop.permute.xlu1 %733 }
 0xae5   :  { %v736_v16 = vadd.f32 %v734_v15, %v726_v14 }
 0xae7   :  { %1566 = vtanh.f32 %v736_v16 }
 0xaf1   :  { %v1567_v62 = vpop.eup %1566 }
 0xaf2   :  { %739 = vrot.lane.b32.xlu0 %v1567_v62, %s1603_s5 }
 0xb64   :  { %v740_v17 = vpop.permute.xlu0 %739 }
 0xb65   :  { %v742_v20 = vmul.f32 %v1565_v10, %v740_v17 }
 0xb67   :  { %744 = vrot.lane.b32.xlu1 %v742_v20, %s1604_s17 }
 0xbd9   :  { %v745_v21 = vpop.permute.xlu1 %744 }
 0xbda   :  { %1425 = vmatmul.mubr.msk.f32.vlgmr.msra.gmra.mrb[10].mxu0 %vm344_vm11, %v745_v21 }
 0xbdb   :  { %1513 = vmatpush3.bf16.msra.mxu0 %v1686_v9  ;;  %1446 = vmatprep.mubr.msk.f32.mxu0 %vm1601_vm1, %v1602_v19 }
 0xbdc   :  { %1514 = vmatprep.subr.bf16.mxu0 %v1600_v11 }
 0xbdf   :  { %1516 = vmatpush3.bf16.msra.mxu0 %v1713_v18 }
 0xbe0   :  { %1523 = vmatprep.subr.bf16.mxu0 %v1600_v11 }
 0xcad   :  { %v814_v22 = vpop.f32.mrb[10].mxu0 }
 0xcae   :  { %v818_v23 = vadd.f32 %v814_v22, %v1753_v4  ;;  %v1426_v24 = vpop.f32.mrb[11].mxu0 }
 0xcaf   :  { %v1149_v24 = vld [vmem:[%s1866_s6 + $0x8] sm:$0xff] }
 0xcb0   :  { %1568 = vtanh.f32 %v818_v23  ;;  %v1269_v26 = vmul.f32 -1.442695, %v818_v23 }
 0xcb2   :  { %1570 = vpow2.f32 %v1269_v26 }
 0xcba   :  { %v1569_v25 = vpop.eup %1568 }
 0xcbb   :  { %828 = vrot.lane.b32.xlu0 %v1569_v25, %s1603_s5  ;;  %v1150_v25 = vld [vmem:[%s1866_s6 + $0x10] sm:$0xff] }
 0xcbc   :  { %v1571_v27 = vpop.eup %1570 }
 0xcbd   :  { %v822_v28 = vadd.f32 1.0, %v1571_v27  ;;  %v1151_v27 = vld [vmem:[%s1866_s6 + $0x18] sm:$0xff] }
 0xcbf   :  { %1572 = vrcp.f32 %v822_v28  ;;  %v1527_v28 = vpack.c.bf16 %v1151_v27, %v1150_v25 }
 0xcc9   :  { %v1573_v29 = vpop.eup %1572 }
 0xcca   :  { %v826_v32 = vmul.f32 %v1573_v29, %v736_v16 }
 0xd2d   :  { %v829_v30 = vpop.permute.xlu0 %828 }
 0xd2e   :  { %v831_v31 = vmul.f32 %v1573_v29, %v829_v30 }
 0xd30   :  { %833 = vrot.lane.b32.xlu1 %v831_v31, %s1604_s17 }
 0xda2   :  { %v834_v33 = vpop.permute.xlu1 %833 }
 0xda3   :  { %v836_v34 = vadd.f32 %v834_v33, %v826_v32 }
 0xda5   :  { %1574 = vtanh.f32 %v836_v34 }
 0xdaf   :  { %v1575_v4 = vpop.eup %1574 }
 0xdb0   :  { %839 = vrot.lane.b32.xlu0 %v1575_v4, %s1603_s5 }
 0xe22   :  { %v840_v35 = vpop.permute.xlu0 %839 }
 0xe23   :  { %v842_v36 = vmul.f32 %v1573_v29, %v840_v35 }
 0xe25   :  { %844 = vrot.lane.b32.xlu1 %v842_v36, %s1604_s17 }
 0xe97   :  { %v845_v37 = vpop.permute.xlu1 %844 }
 0xe98   :  { %1436 = vmatmul.mubr.msk.f32.vlgmr.msra.gmra.mrb[14].mxu1 %vm344_vm11, %v845_v37 }
 0xe99   :  { %1519 = vmatpush3.bf16.msra.mxu1 %v1686_v9  ;;  %1457 = vmatprep.mubr.msk.f32.mxu1 %vm1601_vm1, %v1602_v19 }
 0xe9a   :  { %1520 = vmatprep.subr.bf16.mxu1 %v1600_v11 }
 0xe9d   :  { %1522 = vmatpush3.bf16.msra.mxu1 %v1713_v18 }
 0xf6b   :  { %v914_v38 = vpop.f32.mrb[14].mxu1 }
 0xf6c   :  { %v918_v39 = vadd.f32 %v914_v38, %v1751_v2  ;;  %v1437_v40 = vpop.f32.mrb[15].mxu1 }
 0xf6e   :  { %1576 = vtanh.f32 %v918_v39  ;;  %v1271_v42 = vmul.f32 -1.442695, %v918_v39 }
 0xf70   :  { %1578 = vpow2.f32 %v1271_v42 }
 0xf78   :  { %v1577_v41 = vpop.eup %1576 }
 0xf79   :  { %928 = vrot.lane.b32.xlu0 %v1577_v41, %s1603_s5 }
 0xf7a   :  { %v1579_v43 = vpop.eup %1578 }
 0xf7b   :  { %v922_v44 = vadd.f32 1.0, %v1579_v43 }
 0xf7d   :  { %1580 = vrcp.f32 %v922_v44 }
 0xf87   :  { %v1581_v9 = vpop.eup %1580 }
 0xf88   :  { %v926_v47 = vmul.f32 %v1581_v9, %v836_v34 }
 0xfeb   :  { %v929_v45 = vpop.permute.xlu0 %928 }
 0xfec   :  { %v931_v46 = vmul.f32 %v1581_v9, %v929_v45 }
 0xfee   :  { %933 = vrot.lane.b32.xlu1 %v931_v46, %s1604_s17 }
0x1060   :  { %v934_v18 = vpop.permute.xlu1 %933 }
0x1061   :  { %v936_v48 = vadd.f32 %v934_v18, %v926_v47 }
0x1063   :  { %1582 = vtanh.f32 %v936_v48 }
0x106d   :  { %v1583_v2 = vpop.eup %1582 }
0x106e   :  { %939 = vrot.lane.b32.xlu0 %v1583_v2, %s1603_s5 }
0x10e0   :  { %v940_v49 = vpop.permute.xlu0 %939 }
0x10e1   :  { %v942_v50 = vmul.f32 %v1581_v9, %v940_v49 }
0x10e3   :  { %944 = vrot.lane.b32.xlu1 %v942_v50, %s1604_s17 }
0x1155   :  { %v945_v51 = vpop.permute.xlu1 %944 }
0x1156   :  { %1447 = vmatmul.mubr.msk.f32.vlgmr.msra.gmra.mrb[12].mxu0 %vm344_vm11, %v945_v51 }
0x1157   :  { %1468 = vmatprep.mubr.msk.f32.mxu0 %vm1601_vm1, %v1602_v19 }
0x1229   :  { %v1014_v52 = vpop.f32.mrb[12].mxu0 }
0x122a   :  { %v1018_v53 = vadd.f32 %v1014_v52, %v1757_v8  ;;  %v1448_v54 = vpop.f32.mrb[13].mxu0 }
0x122c   :  { %1584 = vtanh.f32 %v1018_v53  ;;  %v1273_v56 = vmul.f32 -1.442695, %v1018_v53 }
0x122e   :  { %1586 = vpow2.f32 %v1273_v56 }
0x1236   :  { %v1585_v55 = vpop.eup %1584 }
0x1237   :  { %1028 = vrot.lane.b32.xlu0 %v1585_v55, %s1603_s5 }
0x1238   :  { %v1587_v57 = vpop.eup %1586 }
0x1239   :  { %v1022_v58 = vadd.f32 1.0, %v1587_v57 }
0x123b   :  { %1588 = vrcp.f32 %v1022_v58 }
0x1245   :  { %v1589_v59 = vpop.eup %1588 }
0x1246   :  { %v1026_v63 = vmul.f32 %v1589_v59, %v936_v48 }
0x12a9   :  { %v1029_v60 = vpop.permute.xlu0 %1028 }
0x12aa   :  { %v1031_v61 = vmul.f32 %v1589_v59, %v1029_v60 }
0x12ac   :  { %1033 = vrot.lane.b32.xlu1 %v1031_v61, %s1604_s17 }
0x131e   :  { %v1034_v19 = vpop.permute.xlu1 %1033 }
0x131f   :  { %v1036_v0 = vadd.f32 %v1034_v19, %v1026_v63 }
0x1321   :  { %1590 = vtanh.f32 %v1036_v0 }
0x132b   :  { %v1591_v8 = vpop.eup %1590 }
0x132c   :  { %1039 = vrot.lane.b32.xlu0 %v1591_v8, %s1603_s5 }
0x139e   :  { %v1040_v1 = vpop.permute.xlu0 %1039 }
0x139f   :  { %v1042_v3 = vmul.f32 %v1589_v59, %v1040_v1 }
0x13a1   :  { %1044 = vrot.lane.b32.xlu1 %v1042_v3, %s1604_s17 }
0x1413   :  { %v1045_v5 = vpop.permute.xlu1 %1044 }
0x1414   :  { %1458 = vmatmul.mubr.msk.f32.vlgmr.msra.gmra.mrb[16].mxu1 %vm344_vm11, %v1045_v5 }
0x14e7   :  { %v1114_v7 = vpop.f32.mrb[16].mxu1 }
0x14e8   :  { %v1118_v10 = vadd.f32 %v1114_v7, %v1755_v6  ;;  %v1459_v12 = vpop.f32.mrb[17].mxu1  ;;  %v1148_v6 = vld [vmem:[%s1866_s6] sm:$0xff] }
0x14e9   :  { %v1524_v26 = vpack.c.bf16 %v1149_v24, %v1148_v6 }
0x14ea   :  { %1592 = vtanh.f32 %v1118_v10  ;;  %v1275_v14 = vmul.f32 -1.442695, %v1118_v10 }
0x14eb   :  { %1525 = vmatpush3.bf16.msra.mxu0 %v1524_v26 }
0x14ec   :  { %1594 = vpow2.f32 %v1275_v14  ;;  %1526 = vmatprep.subr.bf16.mxu0 %v1600_v11  ;;  %v1276_v11 = vld [vmem:[%s1868_s7] ss:$0 sm:$0xff] }
0x14ef   :  { %1528 = vmatpush3.bf16.msra.mxu0 %v1527_v28 }
0x14f4   :  { %v1593_v13 = vpop.eup %1592 }
0x14f5   :  { %1128 = vrot.lane.b32.xlu0 %v1593_v13, %s1603_s5 }
0x14f6   :  { %v1595_v15 = vpop.eup %1594 }
0x14f7   :  { %v1122_v16 = vadd.f32 1.0, %v1595_v15 }
0x14f9   :  { %1596 = vrcp.f32 %v1122_v16 }
0x1503   :  { %v1597_v62 = vpop.eup %1596 }
0x1504   :  { %v1126_v21 = vmul.f32 %v1597_v62, %v1036_v0 }
0x1567   :  { %v1129_v17 = vpop.permute.xlu0 %1128 }
0x1568   :  { %v1131_v20 = vmul.f32 %v1597_v62, %v1129_v17 }
0x156a   :  { %1133 = vrot.lane.b32.xlu1 %v1131_v20, %s1604_s17 }
0x15dc   :  { %v1134_v22 = vpop.permute.xlu1 %1133 }
0x15dd   :  { %v1136_v23 = vadd.f32 %v1134_v22, %v1126_v21 }
0x15df   :  { %1598 = vtanh.f32 %v1136_v23 }
0x15e9   :  { %v1599_v29 = vpop.eup %1598 }
0x15ea   :  { %1139 = vrot.lane.b32.xlu0 %v1599_v29, %s1603_s5 }
0x165c   :  { %v1140_v30 = vpop.permute.xlu0 %1139 }
0x165d   :  { %v1142_v31 = vmul.f32 %v1597_v62, %v1140_v30 }
0x165f   :  { %1144 = vrot.lane.b32.xlu1 %v1142_v31, %s1604_s17 }
0x16d1   :  { %v1145_v32 = vpop.permute.xlu1 %1144 }
0x16d2   :  { %1147 = vst.msk [vmem:[%s1867_s8] sm:$0xff] %vm344_vm11, %v1145_v32  ;;  %1469 = vmatmul.mubr.msk.f32.vlgmr.msra.gmra.mrb[14].mxu0 %vm344_vm11, %v1145_v32 }
0x17a5   :  { %v1227_v33 = vpop.f32.mrb[14].mxu0 }
0x17a6   :  { %v1228_v34 = vadd.f32 %v1276_v11, %v1227_v33  ;;  %v1470_v4 = vpop.f32.mrb[15].mxu0 }
0x17a8   :  { %vm1231_vm12 = vcmp.ge.f32.partialorder %v1228_v34, 0.0  ;;  %v1232_v35 = vmul.f32 0.1, %v1228_v34 }
0x17aa   :  { %v1233_v36 = vsel %vm1231_vm12, %v1228_v34, %v1232_v35 }
0x17ab   :  { %1234 = vst.msk [vmem:[%s1869_s9] sm:$0xff] %vm210_vm4, %v1233_v36 }

// kernel: csp_encoder_forward.3
= control target key start
LH: loop header
LB: loop body
LE: loop exit
PB: predicated region body
PF: predicated region fallthrough
CT: control target
= control target key end

     0   :  { %vm35_vm0 = vcmask 785408   ;;  %vm138_vm1 = vcmask 1046528   ;;  %vm236_vm2 = vcmask 1045504   ;;  %vm330_vm5 = vcmask 130048   ;;  %s2174_s1 = inlined_call_operand.vmem [shape: f32[3,96,16], index: 1, kind: input, shape index: {}]   ;;  %s2175_s0 = inlined_call_operand.vmem [shape: f32[2,13,96], index: 0, kind: input, shape index: {}]   ;;  %s2176_s3 = inlined_call_operand.vmem [shape: f32[3,16,8], index: 3, kind: input, shape index: {}]   ;;  %s2177_s2 = inlined_call_operand.vmem [shape: f32[1,16], index: 2, kind: input, shape index: {}]   ;;  %s2178_s4 = inlined_call_operand.vmem [shape: f32[1,8], index: 4, kind: input, shape index: {}]   ;;  %s2179_s5 = inlined_call_operand.vmem [shape: f32[2,5,8], index: 5, kind: output, shape index: {}]  }
   0x1   :  { %v23_v0 = vld [vmem:[%s2174_s1] sm:$0xff]  ;;  %v24_v1 = vld [vmem:[%s2174_s1 + $0x8] sm:$0xff]  ;;  %v25_v2 = vld [vmem:[%s2174_s1 + $0x10] sm:$0xff]  ;;  %vm616_vm8 = vcmask 1040384   ;;  %vm618_vm9 = vcmask 1041408   ;;  %vm620_vm10 = vcmask 1042432  }
   0x2   :  { %v1855_v3 = vpack.c.bf16 %v24_v1, %v23_v0  ;;  %v26_v4 = vld [vmem:[%s2174_s1 + $0x18] sm:$0xff]  ;;  %v27_v6 = vld [vmem:[%s2174_s1 + $0x20] sm:$0xff]  ;;  %v28_v7 = vld [vmem:[%s2174_s1 + $0x28] sm:$0xff]  ;;  %vm622_vm11 = vcmask 1043456   ;;  %vm624_vm12 = vcmask 61440  }
   0x3   :  { %v1860_v5 = vpack.c.bf16 %v26_v4, %v25_v2  ;;  %v1873_v8 = vld [vmem:[%s2175_s0] sm:$0xff]  ;;  %v1876_v9 = vpack.c.bf16 %v28_v7, %v27_v6  ;;  %v29_v10 = vld [vmem:[%s2174_s1 + $0x30] sm:$0xff]  ;;  %v30_v11 = vld [vmem:[%s2174_s1 + $0x38] sm:$0xff] }
   0x4   :  { %1625 = vmatprep.subr.bf16.mxu0 %v1855_v3  ;;  %1444 = vmatprep.mubr.msk.f32.mxu0 %vm35_vm0, %v1873_v8  ;;  %v1888_v12 = vpack.c.bf16 %v30_v11, %v29_v10  ;;  %v31_v13 = vld [vmem:[%s2174_s1 + $0x40] sm:$0xff]  ;;  %v32_v14 = vld [vmem:[%s2174_s1 + $0x48] sm:$0xff]  ;;  %v33_v16 = vld [vmem:[%s2174_s1 + $0x50] sm:$0xff]  ;;  %v139_v22 = vrot.slane %v1873_v8, 1  ;;  %v237_v43 = vrot.slane %v1873_v8, 2 }
   0x5   :  { %1627 = vmatpush3.bf16.msra.mxu0 %v1855_v3  ;;  %v1898_v15 = vpack.c.bf16 %v32_v14, %v31_v13  ;;  %v34_v17 = vld [vmem:[%s2174_s1 + $0x58] sm:$0xff]  ;;  %v1228_v19 = vld [vmem:[%s2174_s1 + $0x60] sm:$0xff]  ;;  %v1229_v20 = vld [vmem:[%s2174_s1 + $0x68] sm:$0xff] }
   0x6   :  { %1629 = vmatprep.subr.bf16.mxu0 %v1860_v5  ;;  %v1908_v18 = vpack.c.bf16 %v34_v17, %v33_v16  ;;  %v1920_v21 = vld [vmem:[%s2175_s0 + $0x8] sm:$0x1f]  ;;  %v1924_v23 = vpack.c.bf16 %v1229_v20, %v1228_v19  ;;  %v1230_v25 = vld [vmem:[%s2174_s1 + $0x70] sm:$0xff]  ;;  %v1231_v26 = vld [vmem:[%s2174_s1 + $0x78] sm:$0xff] }
   0x7   :  { %v140_v24 = vrot.slane %v1920_v21, 1  ;;  %v1935_v27 = vpack.c.bf16 %v1231_v26, %v1230_v25  ;;  %v1232_v29 = vld [vmem:[%s2174_s1 + $0x80] sm:$0xff]  ;;  %v1233_v30 = vld [vmem:[%s2174_s1 + $0x88] sm:$0xff]  ;;  %v1234_v32 = vld [vmem:[%s2174_s1 + $0x90] sm:$0xff]  ;;  %v238_v44 = vrot.slane %v1920_v21, 2 }
   0x8   :  { %v1949_v31 = vpack.c.bf16 %v1233_v30, %v1232_v29  ;;  %v1235_v33 = vld [vmem:[%s2174_s1 + $0x98] sm:$0xff]  ;;  %v1236_v35 = vld [vmem:[%s2174_s1 + $0xa0] sm:$0xff]  ;;  %v1237_v36 = vld [vmem:[%s2174_s1 + $0xa8] sm:$0xff] }
   0x9   :  { %1631 = vmatpush3.bf16.msra.mxu0 %v1860_v5  ;;  %v141_v28 = vsel %vm138_vm1, %v139_v22, %v140_v24  ;;  %v1959_v34 = vpack.c.bf16 %v1235_v33, %v1234_v32  ;;  %v1969_v37 = vpack.c.bf16 %v1237_v36, %v1236_v35  ;;  %v1238_v38 = vld [vmem:[%s2174_s1 + $0xb0] sm:$0xff]  ;;  %v1239_v39 = vld [vmem:[%s2174_s1 + $0xb8] sm:$0xff]  ;;  %v1242_v41 = vld [vmem:[%s2174_s1 + $0xc0] sm:$0xff]  ;;  %v239_v49 = vsel %vm236_vm2, %v237_v43, %v238_v44 }
   0xa   :  { %1633 = vmatprep.subr.bf16.mxu0 %v1876_v9  ;;  %v1979_v40 = vpack.c.bf16 %v1239_v39, %v1238_v38  ;;  %v1243_v42 = vld [vmem:[%s2174_s1 + $0xc8] sm:$0xff]  ;;  %v1244_v46 = vld [vmem:[%s2174_s1 + $0xd0] sm:$0xff]  ;;  %v1245_v47 = vld [vmem:[%s2174_s1 + $0xd8] sm:$0xff] }
   0xb   :  { %v1991_v45 = vpack.c.bf16 %v1243_v42, %v1242_v41  ;;  %v2001_v48 = vpack.c.bf16 %v1245_v47, %v1244_v46  ;;  %v1246_v50 = vld [vmem:[%s2174_s1 + $0xe0] sm:$0xff]  ;;  %v1247_v51 = vld [vmem:[%s2174_s1 + $0xe8] sm:$0xff]  ;;  %v1248_v53 = vld [vmem:[%s2174_s1 + $0xf0] sm:$0xff] }
   0xc   :  { %v2014_v52 = vpack.c.bf16 %v1247_v51, %v1246_v50  ;;  %v1249_v54 = vld [vmem:[%s2174_s1 + $0xf8] sm:$0xff]  ;;  %v1250_v56 = vld [vmem:[%s2174_s1 + $0x100] sm:$0xff]  ;;  %v1251_v57 = vld [vmem:[%s2174_s1 + $0x108] sm:$0xff] }
   0xd   :  { %1635 = vmatpush3.bf16.msra.mxu0 %v1876_v9  ;;  %v2024_v55 = vpack.c.bf16 %v1249_v54, %v1248_v53  ;;  %v2034_v58 = vpack.c.bf16 %v1251_v57, %v1250_v56  ;;  %v1252_v59 = vld [vmem:[%s2174_s1 + $0x110] sm:$0xff]  ;;  %v1253_v60 = vld [vmem:[%s2174_s1 + $0x118] sm:$0xff]  ;;  %v328_v62 = vld [vmem:[%s2176_s3] sm:$0xff] }
   0xe   :  { %1637 = vmatprep.subr.bf16.mxu0 %v1888_v12  ;;  %v2044_v61 = vpack.c.bf16 %v1253_v60, %v1252_v59  ;;  %v329_v63 = vld [vmem:[%s2176_s3 + $0x8] sm:$0xff]  ;;  %v1259_v1 = vld [vmem:[%s2176_s3 + $0x10] sm:$0xff]  ;;  %v1260_v2 = vld [vmem:[%s2176_s3 + $0x18] sm:$0xff] }
   0xf   :  { %v1696_v0 = vpack.c.bf16 %v329_v63, %v328_v62  ;;  %v2062_v4 = vpack.c.bf16 %v1260_v2, %v1259_v1  ;;  %v2069_v6 = vld [vmem:[%s2177_s2] ss:$0 sm:$0xff]  ;;  %v1264_v16 = vld [vmem:[%s2176_s3 + $0x28] sm:$0xff]  ;;  %v1267_v30 = vld [vmem:[%s2175_s0 + $0x10] sm:$0xff] }
  0x10   :  { %v1263_v14 = vld [vmem:[%s2176_s3 + $0x20] sm:$0xff]  ;;  %v743_v32 = vrot.slane %v1267_v30, 1 }
  0x11   :  { %1639 = vmatpush3.bf16.msra.mxu0 %v1888_v12  ;;  %1697 = vmatprep.subr.bf16.mxu1 %v1696_v0 }
  0x12   :  { %1641 = vmatprep.subr.bf16.mxu0 %v1898_v15  ;;  %1699 = vmatpush3.bf16.msra.mxu1 %v1696_v0 }
  0x13   :  { %1701 = vmatprep.subr.bf16.mxu1 %v2062_v4 }
  0x15   :  { %1643 = vmatpush3.bf16.msra.mxu0 %v1898_v15 }
  0x16   :  { %1645 = vmatprep.subr.bf16.mxu0 %v1908_v18 }
  0x19   :  { %1647 = vmatpush3.bf16.msra.mxu0 %v1908_v18 }
  0x1a   :  { %1649 = vmatprep.subr.bf16.mxu0 %v1924_v23 }
  0x1c   :  { %1445 = vmatmul.mubr.msk.f32.vlgmr.msra.gmra.mrb[0].mxu0 %vm35_vm0, %v1920_v21 }
  0x1d   :  { %1651 = vmatpush3.bf16.msra.mxu0 %v1924_v23  ;;  %1471 = vmatprep.mubr.msk.f32.mxu0 %vm35_vm0, %v141_v28 }
  0x1e   :  { %1653 = vmatprep.subr.bf16.mxu0 %v1935_v27 }
  0x21   :  { %1655 = vmatpush3.bf16.msra.mxu0 %v1935_v27 }
  0x22   :  { %1657 = vmatprep.subr.bf16.mxu0 %v1949_v31 }
  0x25   :  { %1659 = vmatpush3.bf16.msra.mxu0 %v1949_v31 }
  0x26   :  { %1661 = vmatprep.subr.bf16.mxu0 %v1959_v34 }
  0x29   :  { %1663 = vmatpush3.bf16.msra.mxu0 %v1959_v34 }
  0x2a   :  { %1665 = vmatprep.subr.bf16.mxu0 %v1969_v37 }
  0x2d   :  { %1667 = vmatpush3.bf16.msra.mxu0 %v1969_v37 }
  0x2e   :  { %1669 = vmatprep.subr.bf16.mxu0 %v1979_v40 }
  0x31   :  { %1671 = vmatpush3.bf16.msra.mxu0 %v1979_v40 }
  0x32   :  { %1673 = vmatprep.subr.bf16.mxu0 %v1991_v45 }
  0x34   :  { %1472 = vmatmul.mubr.msk.f32.vlgmr.msra.gmra.mrb[0].mxu0 %vm35_vm0, %v140_v24  ;;  %v2079_v24 = vpack.c.bf16 %v1264_v16, %v1263_v14 }
  0x35   :  { %1675 = vmatpush3.bf16.msra.mxu0 %v1991_v45  ;;  %1498 = vmatprep.mubr.msk.f32.mxu0 %vm35_vm0, %v239_v49 }
  0x36   :  { %1677 = vmatprep.subr.bf16.mxu0 %v2001_v48 }
  0x39   :  { %1679 = vmatpush3.bf16.msra.mxu0 %v2001_v48 }
  0x3a   :  { %1681 = vmatprep.subr.bf16.mxu0 %v2014_v52 }
  0x3d   :  { %1683 = vmatpush3.bf16.msra.mxu0 %v2014_v52 }
  0x3e   :  { %1685 = vmatprep.subr.bf16.mxu0 %v2024_v55 }
  0x41   :  { %1687 = vmatpush3.bf16.msra.mxu0 %v2024_v55 }
  0x42   :  { %1689 = vmatprep.subr.bf16.mxu0 %v2034_v58 }
  0x45   :  { %1691 = vmatpush3.bf16.msra.mxu0 %v2034_v58 }
  0x46   :  { %1693 = vmatprep.subr.bf16.mxu0 %v2044_v61 }
  0x49   :  { %1695 = vmatpush3.bf16.msra.mxu0 %v2044_v61 }
  0x4a   :  { %1781 = vmatprep.subr.bf16.mxu0 %v1696_v0 }
  0x4c   :  { %1499 = vmatmul.mubr.msk.f32.vlgmr.msra.gmra.mrb[0].mxu0 %vm35_vm0, %v238_v44 }
  0x4d   :  { %1783 = vmatpush3.bf16.msra.mxu0 %v1696_v0 }
  0x4e   :  { %1785 = vmatprep.subr.bf16.mxu0 %v2062_v4 }
 0x11f   :  { %v1500_v7 = vpop.f32.mrb[0].mxu0 }
 0x120   :  { %v1792_v8 = vadd.f32 %v1500_v7, %v2069_v6  ;;  %v310_v10 = vpop.f32.mrb[1].mxu0 }
 0x121   :  { %v1793_v11 = vadd.f32 %v2069_v6, %v310_v10 }
 0x122   :  { %vm322_vm3 = vcmp.ge.f32.partialorder %v1792_v8, 0.0  ;;  %v324_v13 = vmul.f32 0.1, %v1792_v8 }
 0x123   :  { %v323_v17 = vmul.f32 0.1, %v1793_v11  ;;  %vm321_vm4 = vcmp.ge.f32.partialorder %v1793_v11, 0.0 }
 0x124   :  { %v326_v19 = vsel %vm322_vm3, %v1792_v8, %v324_v13 }
 0x125   :  { %v325_v20 = vsel %vm321_vm4, %v1793_v11, %v323_v17  ;;  %v424_v21 = vrot.slane %v326_v19, 1  ;;  %v511_v22 = vrot.slane %v326_v19, 2 }
 0x126   :  { %1505 = vmatprep.mubr.msk.f32.mxu1 %vm330_vm5, %v325_v20  ;;  %v423_v25 = vrot.slane %v325_v20, 1  ;;  %v510_v26 = vrot.slane %v325_v20, 2 }
 0x127   :  { %1506 = vmatmul.mubr.msk.f32.vlgmr.msra.gmra.mrb[0].mxu1 %vm330_vm5, %v326_v19 }
 0x128   :  { %1703 = vmatpush3.bf16.msra.mxu1 %v2062_v4  ;;  %v425_v28 = vsel %vm138_vm1, %v423_v25, %v424_v21  ;;  %v512_v29 = vsel %vm236_vm2, %v510_v26, %v511_v22 }
 0x129   :  { %1512 = vmatprep.mubr.msk.f32.mxu1 %vm330_vm5, %v425_v28  ;;  %1705 = vmatprep.subr.bf16.mxu1 %v2079_v24 }
 0x12f   :  { %1513 = vmatmul.mubr.msk.f32.vlgmr.msra.gmra.mrb[0].mxu1 %vm330_vm5, %v424_v21 }
 0x130   :  { %1707 = vmatpush3.bf16.msra.mxu1 %v2079_v24  ;;  %1519 = vmatprep.mubr.msk.f32.mxu1 %vm330_vm5, %v512_v29 }
 0x131   :  { %1709 = vmatprep.subr.bf16.mxu1 %v1855_v3 }
 0x137   :  { %1520 = vmatmul.mubr.msk.f32.vlgmr.msra.gmra.mrb[0].mxu1 %vm330_vm5, %v511_v22 }
 0x138   :  { %1711 = vmatpush3.bf16.msra.mxu1 %v1855_v3  ;;  %1546 = vmatprep.mubr.msk.f32.mxu1 %vm35_vm0, %v1267_v30  ;;  %v1268_v3 = vld [vmem:[%s2175_s0 + $0x18] sm:$0x1f] }
 0x139   :  { %1713 = vmatprep.subr.bf16.mxu1 %v1860_v5 }
 0x13c   :  { %1715 = vmatpush3.bf16.msra.mxu1 %v1860_v5  ;;  %v744_v5 = vrot.slane %v1268_v3, 1 }
 0x13d   :  { %1717 = vmatprep.subr.bf16.mxu1 %v1876_v9 }
 0x140   :  { %1719 = vmatpush3.bf16.msra.mxu1 %v1876_v9  ;;  %v745_v9 = vsel %vm138_vm1, %v743_v32, %v744_v5 }
 0x141   :  { %1721 = vmatprep.subr.bf16.mxu1 %v1888_v12 }
 0x144   :  { %1723 = vmatpush3.bf16.msra.mxu1 %v1888_v12  ;;  %v839_v12 = vrot.slane %v1267_v30, 2 }
 0x145   :  { %1725 = vmatprep.subr.bf16.mxu1 %v1898_v15 }
 0x148   :  { %1727 = vmatpush3.bf16.msra.mxu1 %v1898_v15  ;;  %v840_v15 = vrot.slane %v1268_v3, 2 }
 0x149   :  { %1729 = vmatprep.subr.bf16.mxu1 %v1908_v18 }
 0x14c   :  { %1731 = vmatpush3.bf16.msra.mxu1 %v1908_v18  ;;  %v841_v18 = vsel %vm236_vm2, %v839_v12, %v840_v15 }
 0x14d   :  { %1733 = vmatprep.subr.bf16.mxu1 %v1924_v23 }
 0x14f   :  { %1547 = vmatmul.mubr.msk.f32.vlgmr.msra.gmra.mrb[2].mxu1 %vm35_vm0, %v1268_v3 }
 0x150   :  { %1735 = vmatpush3.bf16.msra.mxu1 %v1924_v23  ;;  %1573 = vmatprep.mubr.msk.f32.mxu1 %vm35_vm0, %v745_v9  ;;  %v1258_v23 = vld [vmem:[%s2178_s4] ss:$0 sm:$0xff] }
 0x151   :  { %1737 = vmatprep.subr.bf16.mxu1 %v1935_v27 }
 0x154   :  { %1739 = vmatpush3.bf16.msra.mxu1 %v1935_v27 }
 0x155   :  { %1741 = vmatprep.subr.bf16.mxu1 %v1949_v31 }
 0x158   :  { %1743 = vmatpush3.bf16.msra.mxu1 %v1949_v31 }
 0x159   :  { %1745 = vmatprep.subr.bf16.mxu1 %v1959_v34 }
 0x15c   :  { %1747 = vmatpush3.bf16.msra.mxu1 %v1959_v34 }
 0x15d   :  { %1749 = vmatprep.subr.bf16.mxu1 %v1969_v37 }
 0x160   :  { %1751 = vmatpush3.bf16.msra.mxu1 %v1969_v37 }
 0x161   :  { %1753 = vmatprep.subr.bf16.mxu1 %v1979_v40 }
 0x164   :  { %1755 = vmatpush3.bf16.msra.mxu1 %v1979_v40 }
 0x165   :  { %1757 = vmatprep.subr.bf16.mxu1 %v1991_v45 }
 0x167   :  { %1574 = vmatmul.mubr.msk.f32.vlgmr.msra.gmra.mrb[2].mxu1 %vm35_vm0, %v744_v5 }
 0x168   :  { %1759 = vmatpush3.bf16.msra.mxu1 %v1991_v45  ;;  %1600 = vmatprep.mubr.msk.f32.mxu1 %vm35_vm0, %v841_v18 }
 0x169   :  { %1761 = vmatprep.subr.bf16.mxu1 %v2001_v48 }
 0x16c   :  { %1763 = vmatpush3.bf16.msra.mxu1 %v2001_v48 }
 0x16d   :  { %1765 = vmatprep.subr.bf16.mxu1 %v2014_v52 }
 0x170   :  { %1767 = vmatpush3.bf16.msra.mxu1 %v2014_v52 }
 0x171   :  { %1769 = vmatprep.subr.bf16.mxu1 %v2024_v55 }
 0x174   :  { %1771 = vmatpush3.bf16.msra.mxu1 %v2024_v55 }
 0x175   :  { %1773 = vmatprep.subr.bf16.mxu1 %v2034_v58 }
 0x178   :  { %1775 = vmatpush3.bf16.msra.mxu1 %v2034_v58 }
 0x179   :  { %1777 = vmatprep.subr.bf16.mxu1 %v2044_v61 }
 0x17c   :  { %1779 = vmatpush3.bf16.msra.mxu1 %v2044_v61 }
 0x17f   :  { %1601 = vmatmul.mubr.msk.f32.vlgmr.msra.gmra.mrb[2].mxu1 %vm35_vm0, %v840_v15 }
 0x20a   :  { %v1521_v27 = vpop.f32.mrb[0].mxu1 }
 0x20b   :  { %v1794_v31 = vadd.f32 %v1521_v27, %v1258_v23  ;;  %v583_v33 = vpop.f32.mrb[1].mxu1 }
 0x20c   :  { %v1795_v34 = vadd.f32 %v1258_v23, %v583_v33 }
 0x20d   :  { %vm595_vm6 = vcmp.ge.f32.partialorder %v1794_v31, 0.0  ;;  %v597_v35 = vmul.f32 0.1, %v1794_v31 }
 0x20e   :  { %vm594_vm7 = vcmp.ge.f32.partialorder %v1795_v34, 0.0  ;;  %v596_v36 = vmul.f32 0.1, %v1795_v34 }
 0x20f   :  { %v599_v37 = vsel %vm595_vm6, %v1794_v31, %v597_v35 }
 0x210   :  { %v605_v38 = vrot.slane %v599_v37, 1  ;;  %v598_v39 = vsel %vm594_vm7, %v1795_v34, %v596_v36 }
 0x211   :  { %v601_v40 = vrot.slane %v598_v39, 1 }
 0x212   :  { %v607_v41 = vmax.f32 %v598_v39, %v605_v38 }
 0x213   :  { %v603_v42 = vmax.f32 %v598_v39, %v601_v40 }
 0x214   :  { %v614_v46 = vrot.slane %v607_v41, 3 }
 0x215   :  { %v609_v43 = vrot.slane %v603_v42, 1  ;;  %v611_v44 = vrot.slane %v603_v42, 2  ;;  %v617_v45 = vsel %vm616_vm8, %v598_v39, %v603_v42 }
 0x217   :  { %v619_v47 = vsel %vm618_vm9, %v617_v45, %v609_v43 }
 0x218   :  { %v621_v48 = vsel %vm620_vm10, %v619_v47, %v611_v44 }
 0x219   :  { %v623_v49 = vsel %vm622_vm11, %v621_v48, %v614_v46 }
 0x21a   :  { %625 = vst.msk [vmem:[%s2179_s5] sm:$0x1f] %vm624_vm12, %v623_v49 }
 0x252   :  { %v1602_v50 = vpop.f32.mrb[2].mxu1 }
 0x253   :  { %v1796_v51 = vadd.f32 %v1602_v50, %v2069_v6  ;;  %v912_v52 = vpop.f32.mrb[3].mxu1 }
 0x254   :  { %v1797_v53 = vadd.f32 %v2069_v6, %v912_v52 }
 0x255   :  { %vm924_vm13 = vcmp.ge.f32.partialorder %v1796_v51, 0.0  ;;  %v926_v54 = vmul.f32 0.1, %v1796_v51 }
 0x256   :  { %vm923_vm14 = vcmp.ge.f32.partialorder %v1797_v53, 0.0  ;;  %v925_v55 = vmul.f32 0.1, %v1797_v53 }
 0x257   :  { %v928_v56 = vsel %vm924_vm13, %v1796_v51, %v926_v54 }
 0x258   :  { %v1024_v57 = vrot.slane %v928_v56, 1  ;;  %v1110_v58 = vrot.slane %v928_v56, 2  ;;  %v927_v59 = vsel %vm923_vm14, %v1797_v53, %v925_v55 }
 0x259   :  { %1607 = vmatprep.mubr.msk.f32.mxu0 %vm330_vm5, %v927_v59  ;;  %v1023_v60 = vrot.slane %v927_v59, 1  ;;  %v1109_v61 = vrot.slane %v927_v59, 2 }
 0x25a   :  { %1608 = vmatmul.mubr.msk.f32.vlgmr.msra.gmra.mrb[2].mxu0 %vm330_vm5, %v928_v56 }
 0x25b   :  { %1787 = vmatpush3.bf16.msra.mxu0 %v2062_v4  ;;  %v1025_v62 = vsel %vm138_vm1, %v1023_v60, %v1024_v57  ;;  %v1111_v63 = vsel %vm236_vm2, %v1109_v61, %v1110_v58 }
 0x25c   :  { %1614 = vmatprep.mubr.msk.f32.mxu0 %vm330_vm5, %v1025_v62  ;;  %1789 = vmatprep.subr.bf16.mxu0 %v2079_v24 }
 0x262   :  { %1615 = vmatmul.mubr.msk.f32.vlgmr.msra.gmra.mrb[2].mxu0 %vm330_vm5, %v1024_v57 }
 0x263   :  { %1791 = vmatpush3.bf16.msra.mxu0 %v2079_v24  ;;  %1621 = vmatprep.mubr.msk.f32.mxu0 %vm330_vm5, %v1111_v63 }
 0x26a   :  { %1622 = vmatmul.mubr.msk.f32.vlgmr.msra.gmra.mrb[2].mxu0 %vm330_vm5, %v1110_v58 }
 0x33d   :  { %v1623_v0 = vpop.f32.mrb[2].mxu0 }
 0x33e   :  { %v1798_v1 = vadd.f32 %v1623_v0, %v1258_v23  ;;  %v1182_v2 = vpop.f32.mrb[3].mxu0 }
 0x33f   :  { %v1799_v4 = vadd.f32 %v1258_v23, %v1182_v2 }
 0x340   :  { %vm1194_vm15 = vcmp.ge.f32.partialorder %v1798_v1, 0.0  ;;  %v1196_v6 = vmul.f32 0.1, %v1798_v1 }
 0x341   :  { %vm1193_vm0 = vcmp.ge.f32.partialorder %v1799_v4, 0.0  ;;  %v1195_v7 = vmul.f32 0.1, %v1799_v4 }
 0x342   :  { %v1198_v8 = vsel %vm1194_vm15, %v1798_v1, %v1196_v6 }
 0x343   :  { %v1204_v10 = vrot.slane %v1198_v8, 1  ;;  %v1197_v11 = vsel %vm1193_vm0, %v1799_v4, %v1195_v7 }
 0x344   :  { %v1200_v13 = vrot.slane %v1197_v11, 1 }
 0x345   :  { %v1206_v14 = vmax.f32 %v1197_v11, %v1204_v10 }
 0x346   :  { %v1202_v16 = vmax.f32 %v1197_v11, %v1200_v13 }
 0x347   :  { %v1213_v21 = vrot.slane %v1206_v14, 3 }
 0x348   :  { %v1208_v17 = vrot.slane %v1202_v16, 1  ;;  %v1210_v19 = vrot.slane %v1202_v16, 2  ;;  %v1215_v20 = vsel %vm616_vm8, %v1197_v11, %v1202_v16 }
 0x34a   :  { %v1216_v22 = vsel %vm618_vm9, %v1215_v20, %v1208_v17 }
 0x34b   :  { %v1217_v24 = vsel %vm620_vm10, %v1216_v22, %v1210_v19 }
 0x34c   :  { %v1218_v25 = vsel %vm622_vm11, %v1217_v24, %v1213_v21 }
 0x34d   :  { %1311 = vst.msk [vmem:[%s2179_s5 + $0x8] sm:$0x1f] %vm624_vm12, %v1218_v25 }

</bundles_post_ra>
